<compile_context>
chip_gen: v5e
topology: v5e:2x2
jax: 0.10.0
libtpu: 0.0.40
codegen_flags: <defaults>
</compile_context>

<pallas_src>
import functools
from dataclasses import dataclass

import jax
import jax.numpy as jnp
from jax import lax
from jax.experimental import pallas as pl
from jax.experimental.pallas import tpu as pltpu


# ----------------------------- config ---------------------------------------

@dataclass
class GMSTConfig:
    in_channels: int = 4
    embed_dim: int = 32
    patch_size: int = 4
    overlap_patches: int = 1
    num_heads: int = 4
    ffn_hidden_channels_encoder: int = 64
    depth: int = 2
    img_size: int = 16


# --------------------------- fused Pallas kernel -----------------------------

def _encoder_kernel(
    patches_ref, pe_w_ref, wqkv_ref, wo_ref, w1_ref, w2_ref,
    blk_vecs_ref, glob_vecs_ref, o_ref, *, depth, num_heads, np_tokens, eps,
):
    """One grid step = `batch_per_step` batch elements (rows = bps*Np tokens)."""
    rows, D = o_ref.shape
    Np = np_tokens
    bps = rows // Np
    dh = D // num_heads
    F = w1_ref.shape[-1]
    bf16 = jnp.bfloat16

    # packed global vectors: pe_b, pe_g, pe_be, nf_g, nf_b (one sublane each)
    gv = glob_vecs_ref[...]
    pe_b, pe_g, pe_be = gv[0:1, :D], gv[1:2, :D], gv[2:3, :D]
    nf_g, nf_b = gv[3:4, :D], gv[4:5, :D]

    def ln(x, g, b):
        mean = jnp.mean(x, axis=-1, keepdims=True)
        var = jnp.mean((x - mean) ** 2, axis=-1, keepdims=True)
        return (x - mean) * lax.rsqrt(var + eps) * g + b

    # --- OverlapPatchEmbed: conv-as-matmul (bf16 MXU, f32 acc) + LayerNorm ---
    tok = jnp.dot(patches_ref[...], pe_w_ref[...],
                  preferred_element_type=jnp.float32) + pe_b
    tok = ln(tok, pe_g, pe_be)

    # --- GMST blocks: pre-norm MHSA + pre-norm FFN, both with residuals ---
    # TODO(synk): at depth=2 a static unroll is fine; switch to lax.fori_loop
    # with dynamic leading-axis weight indexing if depth grows past ~4.
    for d in range(depth):
        bv = blk_vecs_ref[d]                    # (8, VEC_W) packed per-block vectors
        n1_g, n1_b = bv[0:1, :D], bv[1:2, :D]
        bqkv = bv[2:3, :3 * D]
        bo = bv[3:4, :D]
        n2_g, n2_b = bv[4:5, :D], bv[5:6, :D]
        b1 = bv[6:7, :F]
        b2 = bv[7:8, :D]

        # fused QKV projection on the full multi-batch slab (scale pre-folded
        # into the Q columns of wqkv at init time).
        h = ln(tok, n1_g, n1_b)
        qkv = jnp.dot(h.astype(bf16), wqkv_ref[d],
                      preferred_element_type=jnp.float32) + bqkv

        # attention: token mixing is per batch element; head outputs are
        # lane-concatenated and the out-projection is ONE (rows,D)x(D,D) dot.
        per_elem = []
        for bb in range(bps):
            r0 = bb * Np
            heads = []
            for hd in range(num_heads):
                lo = hd * dh
                qh = qkv[r0:r0 + Np, lo:lo + dh].astype(bf16)
                kh = qkv[r0:r0 + Np, D + lo:D + lo + dh].astype(bf16)
                vh = qkv[r0:r0 + Np, 2 * D + lo:2 * D + lo + dh].astype(bf16)
                s = lax.dot_general(qh, kh, (((1,), (1,)), ((), ())),
                                    preferred_element_type=jnp.float32)
                s = s - jnp.max(s, axis=-1, keepdims=True)
                p = jnp.exp(s)
                p = p * pl.reciprocal(jnp.sum(p, axis=-1, keepdims=True),
                                      approx=True)
                heads.append(jnp.dot(p.astype(bf16), vh,
                                     preferred_element_type=jnp.float32))
            per_elem.append(jnp.concatenate(heads, axis=-1))      # (Np, D)
        attn = per_elem[0] if bps == 1 else jnp.concatenate(per_elem, axis=0)
        attn_proj = jnp.dot(attn.astype(bf16), wo_ref[d],
                            preferred_element_type=jnp.float32)
        tok = tok + attn_proj + bo

        # FFN
        h2 = ln(tok, n2_g, n2_b)
        f = jnp.dot(h2.astype(bf16), w1_ref[d],
                    preferred_element_type=jnp.float32) + b1
        # TODO(synk): PyTorch nn.GELU defaults to the exact erf form; tanh
        # approximation used here for robust Mosaic lowering (~1e-3 deviation).
        f = jax.nn.gelu(f, approximate=True)
        tok = tok + jnp.dot(f.astype(bf16), w2_ref[d],
                            preferred_element_type=jnp.float32) + b2

    # --- final LayerNorm ---
    o_ref[...] = ln(tok, nf_g, nf_b).astype(o_ref.dtype)


# --------------------------- parameters -------------------------------------

def init_params(cfg: GMSTConfig, key):
    D = cfg.embed_dim
    C = cfg.in_channels
    k = cfg.patch_size + 2 * cfg.overlap_patches
    F = cfg.ffn_hidden_channels_encoder
    depth = cfg.depth
    dh = D // cfg.num_heads
    scale = 1.0 / float(dh) ** 0.5
    vec_w = 128 * max(1, -(-max(3 * D, F, D) // 128))   # packed-vector lane width

    def dense(kk, shape):
        return 0.02 * jax.random.normal(kk, shape, jnp.float32)

    def pad_lane(v):
        return jnp.pad(v, (0, vec_w - v.shape[0]))

    keys = jax.random.split(key, 1 + depth)

    # Conv2d(C, D, k, stride=patch, pad=overlap) weight flattened:
    # PyTorch weight (D, C, kh, kw) -> (C*kh*kw, D), C-major then kh, kw
    # (matches lax.conv_general_dilated_patches feature ordering).
    pe_w = dense(keys[0], (C * k * k, D))

    # packed global vectors: pe_b, pe_g, pe_be, nf_g, nf_b
    glob_vecs = jnp.stack([
        pad_lane(jnp.zeros((D,), jnp.float32)),   # pe_b
        pad_lane(jnp.ones((D,), jnp.float32)),    # pe_g
        pad_lane(jnp.zeros((D,), jnp.float32)),   # pe_be
        pad_lane(jnp.ones((D,), jnp.float32)),    # nf_g
        pad_lane(jnp.zeros((D,), jnp.float32)),   # nf_b
    ])                                            # (5, vec_w) f32

    wqkv, wo, w1, w2, blk = [], [], [], [], []
    for d in range(depth):
        ks = jax.random.split(keys[1 + d], 6)
        wq = dense(ks[0], (D, D)) * scale         # fold 1/sqrt(dh) into Q cols
        wk = dense(ks[1], (D, D))
        wv = dense(ks[2], (D, D))
        wqkv.append(jnp.concatenate([wq, wk, wv], axis=1))   # fused QKV (D, 3D)
        wo.append(dense(ks[3], (D, D)))
        w1.append(dense(ks[4], (D, F)))
        w2.append(dense(ks[5], (F, D)))
        blk.append(jnp.stack([
            pad_lane(jnp.ones((D,), jnp.float32)),      # n1_g
            pad_lane(jnp.zeros((D,), jnp.float32)),     # n1_b
            pad_lane(jnp.zeros((3 * D,), jnp.float32)), # bqkv (Q part pre-scaled)
            pad_lane(jnp.zeros((D,), jnp.float32)),     # bo
            pad_lane(jnp.ones((D,), jnp.float32)),      # n2_g
            pad_lane(jnp.zeros((D,), jnp.float32)),     # n2_b
            pad_lane(jnp.zeros((F,), jnp.float32)),     # b1
            pad_lane(jnp.zeros((D,), jnp.float32)),     # b2
        ]))                                             # (8, vec_w)

    return {
        "pe_w": pe_w.astype(jnp.bfloat16),
        "wqkv": jnp.stack(wqkv).astype(jnp.bfloat16),
        "wo": jnp.stack(wo).astype(jnp.bfloat16),
        "w1": jnp.stack(w1).astype(jnp.bfloat16),
        "w2": jnp.stack(w2).astype(jnp.bfloat16),
        "blk_vecs": jnp.stack(blk),                     # (depth, 8, vec_w) f32
        "glob_vecs": glob_vecs,                         # (5, vec_w) f32
    }


# ----------------------------- forward --------------------------------------

def _choose_batch_per_step(B, Np, target_rows=256):
    """Largest divisor of B with bps*Np <= target_rows, keeping >=2 grid steps
    (v7x has 2 TensorCores; a single-step kernel forfeits ~2x there)."""
    best = 1
    for bps in range(1, B + 1):
        if B % bps != 0:
            continue
        if bps * Np > target_rows:
            continue
        if B >= 2 and B // bps < 2:
            continue
        best = bps
    return best


def _padded_bytes(shape, dtype):
    dims = list(shape)
    dims[-1] = -(-dims[-1] // 128) * 128
    if len(dims) >= 2:
        dims[-2] = -(-dims[-2] // 8) * 8
    n = 1
    for d in dims:
        n *= d
    return n * jnp.dtype(dtype).itemsize


def gmst_encoder_forward(params, cfg: GMSTConfig, x):
    """x: (B, C, H, W) NCHW.  Returns (tokens (B, Np, D), H', W')."""
    B, C, Himg, Wimg = x.shape
    k = cfg.patch_size + 2 * cfg.overlap_patches
    stride = cfg.patch_size
    pad = cfg.overlap_patches
    Hout = (Himg + 2 * pad - k) // stride + 1
    Wout = (Wimg + 2 * pad - k) // stride + 1
    Np = Hout * Wout
    D = cfg.embed_dim
    CKK = C * k * k

    # --- im2col patch extraction (pure layout glue, stays in plain JAX) ---
    # TODO(synk): feature ordering vs PyTorch Conv2d weight flattening should be
    # confirmed with a numerical parity test against the torch module.
    patches = lax.conv_general_dilated_patches(
        x, (k, k), (stride, stride), [(pad, pad), (pad, pad)]
    )  # (B, C*k*k, Hout, Wout)
    patches = patches.reshape(B, CKK, Np).transpose(0, 2, 1).reshape(B * Np, CKK)
    patches = patches.astype(jnp.bfloat16)   # bf16 MXU input; f32 acc in-kernel

    bps = _choose_batch_per_step(B, Np)
    rows_per_step = bps * Np                  # NOTE: Np must be a multiple of 8
    grid = (B // bps,)

    weight_names = ("pe_w", "wqkv", "wo", "w1", "w2", "blk_vecs", "glob_vecs")
    weights = [params[n] for n in weight_names]

    def full_spec(a):
        zeros = (0,) * a.ndim
        return pl.BlockSpec(a.shape, lambda i, _z=zeros: _z)

    # VMEM budget from actual (8,128)-padded, double-buffered operand sizes
    # (re-derived per config; v7x has only 64 MiB total VMEM).
    operand_bytes = (
        _padded_bytes((rows_per_step, CKK), patches.dtype)
        + sum(_padded_bytes(w.shape, w.dtype) for w in weights)
        + _padded_bytes((rows_per_step, D), jnp.float32)
    )
    vmem_limit = int(min(100 * 2 ** 20, max(16 * 2 ** 20, 8 * operand_bytes)))

    out = pl.pallas_call(
        functools.partial(
            _encoder_kernel,
            depth=cfg.depth,
            num_heads=cfg.num_heads,
            np_tokens=Np,
            eps=1e-5,
        ),
        out_shape=jax.ShapeDtypeStruct((B * Np, D), jnp.float32),
        grid=grid,
        in_specs=[pl.BlockSpec((rows_per_step, CKK), lambda i: (i, 0))]
        + [full_spec(w) for w in weights],
        out_specs=pl.BlockSpec((rows_per_step, D), lambda i: (i, 0)),
        compiler_params=pltpu.CompilerParams(
            dimension_semantics=("parallel",),
            vmem_limit_bytes=vmem_limit,
        ),
    )(patches, *weights)

    return out.reshape(B, Np, D), Hout, Wout


# ------------------------------- main ----------------------------------------

if __name__ == "__main__":
    cfg = GMSTConfig()
    key = jax.random.PRNGKey(0)
    pkey, xkey = jax.random.split(key)
    params = init_params(cfg, pkey)

    B = 2
    x = jax.random.normal(
        xkey, (B, cfg.in_channels, cfg.img_size, cfg.img_size), jnp.float32
    )

    out, H, W = gmst_encoder_forward(params, cfg, x)
    out = jax.block_until_ready(out)
    assert out.shape == (B, H * W, cfg.embed_dim), out.shape
    print("KERNEL_OK")
</pallas_src>

<mosaic_0001>
module attributes {stable_mosaic.version = 11 : i64} {
  func.func @_encoder_kernel(%arg0: i32, %arg1: memref<16x144xbf16, #tpu.memory_space<vmem>>, %arg2: memref<144x32xbf16, #tpu.memory_space<vmem>>, %arg3: memref<2x32x96xbf16, #tpu.memory_space<vmem>>, %arg4: memref<2x32x32xbf16, #tpu.memory_space<vmem>>, %arg5: memref<2x32x64xbf16, #tpu.memory_space<vmem>>, %arg6: memref<2x64x32xbf16, #tpu.memory_space<vmem>>, %arg7: memref<2x8x128xf32, #tpu.memory_space<vmem>>, %arg8: memref<5x128xf32, #tpu.memory_space<vmem>>, %arg9: memref<16x32xf32, #tpu.memory_space<vmem>>) attributes {dimension_semantics = [#tpu.dimension_semantics<parallel>], iteration_bounds = array<i64: 2>, scalar_prefetch = 0 : i64, scratch_operands = 0 : i64, tpu.core_type = #tpu.core_type<tc>, window_params = [{transform_indices = @transform_0, window_bounds = array<i64: 16, 144>}, {pipeline_mode = #tpu.pipeline_mode<synchronous>, transform_indices = @transform_1, window_bounds = array<i64: 144, 32>}, {pipeline_mode = #tpu.pipeline_mode<synchronous>, transform_indices = @transform_2, window_bounds = array<i64: 2, 32, 96>}, {pipeline_mode = #tpu.pipeline_mode<synchronous>, transform_indices = @transform_3, window_bounds = array<i64: 2, 32, 32>}, {pipeline_mode = #tpu.pipeline_mode<synchronous>, transform_indices = @transform_4, window_bounds = array<i64: 2, 32, 64>}, {pipeline_mode = #tpu.pipeline_mode<synchronous>, transform_indices = @transform_5, window_bounds = array<i64: 2, 64, 32>}, {pipeline_mode = #tpu.pipeline_mode<synchronous>, transform_indices = @transform_6, window_bounds = array<i64: 2, 8, 128>}, {pipeline_mode = #tpu.pipeline_mode<synchronous>, transform_indices = @transform_7, window_bounds = array<i64: 5, 128>}, {transform_indices = @transform_8, window_bounds = array<i64: 16, 32>}]} {
    %c0 = arith.constant 0 : index
    %c0_0 = arith.constant 0 : index
    %0 = vector.load %arg8[%c0, %c0_0] : memref<5x128xf32, #tpu.memory_space<vmem>>, vector<5x128xf32>
    %1 = vector.extract_strided_slice %0 {offsets = [0, 0], sizes = [1, 32], strides = [1, 1]} : vector<5x128xf32> to vector<1x32xf32>
    %2 = vector.extract_strided_slice %0 {offsets = [1, 0], sizes = [1, 32], strides = [1, 1]} : vector<5x128xf32> to vector<1x32xf32>
    %3 = vector.extract_strided_slice %0 {offsets = [2, 0], sizes = [1, 32], strides = [1, 1]} : vector<5x128xf32> to vector<1x32xf32>
    %4 = vector.extract_strided_slice %0 {offsets = [3, 0], sizes = [1, 32], strides = [1, 1]} : vector<5x128xf32> to vector<1x32xf32>
    %5 = vector.extract_strided_slice %0 {offsets = [4, 0], sizes = [1, 32], strides = [1, 1]} : vector<5x128xf32> to vector<1x32xf32>
    %c0_1 = arith.constant 0 : index
    %c0_2 = arith.constant 0 : index
    %6 = vector.load %arg1[%c0_1, %c0_2] : memref<16x144xbf16, #tpu.memory_space<vmem>>, vector<16x144xbf16>
    %c0_3 = arith.constant 0 : index
    %c0_4 = arith.constant 0 : index
    %7 = vector.load %arg2[%c0_3, %c0_4] : memref<144x32xbf16, #tpu.memory_space<vmem>>, vector<144x32xbf16>
    %cst = arith.constant dense<0.000000e+00> : vector<16x32xf32>
    %8 = tpu.matmul %6, %7, %cst {dimension_numbers = #tpu.dot_dimension_numbers<[1], [0], [0], [1], [0, 0, 1, 1], [], []>} : vector<16x144xbf16>, vector<144x32xbf16>, vector<16x32xf32> -> vector<16x32xf32>
    %9 = vector.broadcast %1 : vector<1x32xf32> to vector<16x32xf32>
    %10 = arith.addf %8, %9 : vector<16x32xf32>
    %cst_5 = arith.constant dense<0.000000e+00> : vector<16xf32>
    %11 = vector.multi_reduction <add>, %10, %cst_5 [1] : vector<16x32xf32> to vector<16xf32>
    %12 = vector.shape_cast %11 : vector<16xf32> to vector<16x1xf32>
    %cst_6 = arith.constant 3.200000e+01 : f32
    %13 = vector.broadcast %cst_6 : f32 to vector<16x1xf32>
    %14 = arith.divf %12, %13 : vector<16x1xf32>
    %15 = vector.broadcast %14 : vector<16x1xf32> to vector<16x32xf32>
    %16 = arith.subf %10, %15 : vector<16x32xf32>
    %17 = arith.mulf %16, %16 : vector<16x32xf32>
    %cst_7 = arith.constant dense<0.000000e+00> : vector<16xf32>
    %18 = vector.multi_reduction <add>, %17, %cst_7 [1] : vector<16x32xf32> to vector<16xf32>
    %19 = vector.shape_cast %18 : vector<16xf32> to vector<16x1xf32>
    %cst_8 = arith.constant 3.200000e+01 : f32
    %20 = vector.broadcast %cst_8 : f32 to vector<16x1xf32>
    %21 = arith.divf %19, %20 : vector<16x1xf32>
    %22 = vector.broadcast %14 : vector<16x1xf32> to vector<16x32xf32>
    %23 = arith.subf %10, %22 : vector<16x32xf32>
    %cst_9 = arith.constant 9.99999974E-6 : f32
    %24 = vector.broadcast %cst_9 : f32 to vector<16x1xf32>
    %25 = arith.addf %21, %24 : vector<16x1xf32>
    %26 = math.rsqrt %25 : vector<16x1xf32>
    %27 = vector.broadcast %26 : vector<16x1xf32> to vector<16x32xf32>
    %28 = arith.mulf %23, %27 : vector<16x32xf32>
    %29 = vector.broadcast %2 : vector<1x32xf32> to vector<16x32xf32>
    %30 = arith.mulf %28, %29 : vector<16x32xf32>
    %31 = vector.broadcast %3 : vector<1x32xf32> to vector<16x32xf32>
    %32 = arith.addf %30, %31 : vector<16x32xf32>
    %c0_10 = arith.constant 0 : index
    %c0_11 = arith.constant 0 : index
    %c0_12 = arith.constant 0 : index
    %33 = vector.load %arg7[%c0_10, %c0_11, %c0_12] : memref<2x8x128xf32, #tpu.memory_space<vmem>>, vector<1x8x128xf32>
    %34 = vector.shape_cast %33 : vector<1x8x128xf32> to vector<8x128xf32>
    %35 = vector.extract_strided_slice %34 {offsets = [0, 0], sizes = [1, 32], strides = [1, 1]} : vector<8x128xf32> to vector<1x32xf32>
    %36 = vector.extract_strided_slice %34 {offsets = [1, 0], sizes = [1, 32], strides = [1, 1]} : vector<8x128xf32> to vector<1x32xf32>
    %37 = vector.extract_strided_slice %34 {offsets = [2, 0], sizes = [1, 96], strides = [1, 1]} : vector<8x128xf32> to vector<1x96xf32>
    %38 = vector.extract_strided_slice %34 {offsets = [3, 0], sizes = [1, 32], strides = [1, 1]} : vector<8x128xf32> to vector<1x32xf32>
    %39 = vector.extract_strided_slice %34 {offsets = [4, 0], sizes = [1, 32], strides = [1, 1]} : vector<8x128xf32> to vector<1x32xf32>
    %40 = vector.extract_strided_slice %34 {offsets = [5, 0], sizes = [1, 32], strides = [1, 1]} : vector<8x128xf32> to vector<1x32xf32>
    %41 = vector.extract_strided_slice %34 {offsets = [6, 0], sizes = [1, 64], strides = [1, 1]} : vector<8x128xf32> to vector<1x64xf32>
    %42 = vector.extract_strided_slice %34 {offsets = [7, 0], sizes = [1, 32], strides = [1, 1]} : vector<8x128xf32> to vector<1x32xf32>
    %cst_13 = arith.constant dense<0.000000e+00> : vector<16xf32>
    %43 = vector.multi_reduction <add>, %32, %cst_13 [1] : vector<16x32xf32> to vector<16xf32>
    %44 = vector.shape_cast %43 : vector<16xf32> to vector<16x1xf32>
    %cst_14 = arith.constant 3.200000e+01 : f32
    %45 = vector.broadcast %cst_14 : f32 to vector<16x1xf32>
    %46 = arith.divf %44, %45 : vector<16x1xf32>
    %47 = vector.broadcast %46 : vector<16x1xf32> to vector<16x32xf32>
    %48 = arith.subf %32, %47 : vector<16x32xf32>
    %49 = arith.mulf %48, %48 : vector<16x32xf32>
    %cst_15 = arith.constant dense<0.000000e+00> : vector<16xf32>
    %50 = vector.multi_reduction <add>, %49, %cst_15 [1] : vector<16x32xf32> to vector<16xf32>
    %51 = vector.shape_cast %50 : vector<16xf32> to vector<16x1xf32>
    %cst_16 = arith.constant 3.200000e+01 : f32
    %52 = vector.broadcast %cst_16 : f32 to vector<16x1xf32>
    %53 = arith.divf %51, %52 : vector<16x1xf32>
    %54 = vector.broadcast %46 : vector<16x1xf32> to vector<16x32xf32>
    %55 = arith.subf %32, %54 : vector<16x32xf32>
    %cst_17 = arith.constant 9.99999974E-6 : f32
    %56 = vector.broadcast %cst_17 : f32 to vector<16x1xf32>
    %57 = arith.addf %53, %56 : vector<16x1xf32>
    %58 = math.rsqrt %57 : vector<16x1xf32>
    %59 = vector.broadcast %58 : vector<16x1xf32> to vector<16x32xf32>
    %60 = arith.mulf %55, %59 : vector<16x32xf32>
    %61 = vector.broadcast %35 : vector<1x32xf32> to vector<16x32xf32>
    %62 = arith.mulf %60, %61 : vector<16x32xf32>
    %63 = vector.broadcast %36 : vector<1x32xf32> to vector<16x32xf32>
    %64 = arith.addf %62, %63 : vector<16x32xf32>
    %65 = arith.truncf %64 : vector<16x32xf32> to vector<16x32xbf16>
    %c0_18 = arith.constant 0 : index
    %c0_19 = arith.constant 0 : index
    %c0_20 = arith.constant 0 : index
    %66 = vector.load %arg3[%c0_18, %c0_19, %c0_20] : memref<2x32x96xbf16, #tpu.memory_space<vmem>>, vector<1x32x96xbf16>
    %67 = vector.shape_cast %66 : vector<1x32x96xbf16> to vector<32x96xbf16>
    %cst_21 = arith.constant dense<0.000000e+00> : vector<16x96xf32>
    %68 = tpu.matmul %65, %67, %cst_21 {dimension_numbers = #tpu.dot_dimension_numbers<[1], [0], [0], [1], [0, 0, 1, 1], [], []>} : vector<16x32xbf16>, vector<32x96xbf16>, vector<16x96xf32> -> vector<16x96xf32>
    %69 = vector.broadcast %37 : vector<1x96xf32> to vector<16x96xf32>
    %70 = arith.addf %68, %69 : vector<16x96xf32>
    %71 = vector.extract_strided_slice %70 {offsets = [0, 0], sizes = [16, 8], strides = [1, 1]} : vector<16x96xf32> to vector<16x8xf32>
    %72 = arith.truncf %71 : vector<16x8xf32> to vector<16x8xbf16>
    %73 = vector.extract_strided_slice %70 {offsets = [0, 32], sizes = [16, 8], strides = [1, 1]} : vector<16x96xf32> to vector<16x8xf32>
    %74 = arith.truncf %73 : vector<16x8xf32> to vector<16x8xbf16>
    %75 = vector.extract_strided_slice %70 {offsets = [0, 64], sizes = [16, 8], strides = [1, 1]} : vector<16x96xf32> to vector<16x8xf32>
    %76 = arith.truncf %75 : vector<16x8xf32> to vector<16x8xbf16>
    %cst_22 = arith.constant dense<0.000000e+00> : vector<16x16xf32>
    %77 = tpu.matmul %72, %74, %cst_22 {dimension_numbers = #tpu.dot_dimension_numbers<[1], [1], [0], [0], [0, 0, 1, 0], [], []>} : vector<16x8xbf16>, vector<16x8xbf16>, vector<16x16xf32> -> vector<16x16xf32>
    %cst_23 = arith.constant dense<0xFF800000> : vector<16xf32>
    %78 = vector.multi_reduction <maximumf>, %77, %cst_23 [1] : vector<16x16xf32> to vector<16xf32>
    %79 = vector.shape_cast %78 : vector<16xf32> to vector<16x1xf32>
    %80 = vector.broadcast %79 : vector<16x1xf32> to vector<16x16xf32>
    %81 = arith.subf %77, %80 : vector<16x16xf32>
    %82 = math.exp %81 : vector<16x16xf32>
    %cst_24 = arith.constant dense<0.000000e+00> : vector<16xf32>
    %83 = vector.multi_reduction <add>, %82, %cst_24 [1] : vector<16x16xf32> to vector<16xf32>
    %84 = vector.shape_cast %83 : vector<16xf32> to vector<16x1xf32>
    %85 = tpu.reciprocal %84 {approx = true} : vector<16x1xf32> -> vector<16x1xf32>
    %86 = vector.broadcast %85 : vector<16x1xf32> to vector<16x16xf32>
    %87 = arith.mulf %82, %86 : vector<16x16xf32>
    %88 = arith.truncf %87 : vector<16x16xf32> to vector<16x16xbf16>
    %cst_25 = arith.constant dense<0.000000e+00> : vector<16x8xf32>
    %89 = tpu.matmul %88, %76, %cst_25 {dimension_numbers = #tpu.dot_dimension_numbers<[1], [0], [0], [1], [0, 0, 1, 1], [], []>} : vector<16x16xbf16>, vector<16x8xbf16>, vector<16x8xf32> -> vector<16x8xf32>
    %90 = vector.extract_strided_slice %70 {offsets = [0, 8], sizes = [16, 8], strides = [1, 1]} : vector<16x96xf32> to vector<16x8xf32>
    %91 = arith.truncf %90 : vector<16x8xf32> to vector<16x8xbf16>
    %92 = vector.extract_strided_slice %70 {offsets = [0, 40], sizes = [16, 8], strides = [1, 1]} : vector<16x96xf32> to vector<16x8xf32>
    %93 = arith.truncf %92 : vector<16x8xf32> to vector<16x8xbf16>
    %94 = vector.extract_strided_slice %70 {offsets = [0, 72], sizes = [16, 8], strides = [1, 1]} : vector<16x96xf32> to vector<16x8xf32>
    %95 = arith.truncf %94 : vector<16x8xf32> to vector<16x8xbf16>
    %cst_26 = arith.constant dense<0.000000e+00> : vector<16x16xf32>
    %96 = tpu.matmul %91, %93, %cst_26 {dimension_numbers = #tpu.dot_dimension_numbers<[1], [1], [0], [0], [0, 0, 1, 0], [], []>} : vector<16x8xbf16>, vector<16x8xbf16>, vector<16x16xf32> -> vector<16x16xf32>
    %cst_27 = arith.constant dense<0xFF800000> : vector<16xf32>
    %97 = vector.multi_reduction <maximumf>, %96, %cst_27 [1] : vector<16x16xf32> to vector<16xf32>
    %98 = vector.shape_cast %97 : vector<16xf32> to vector<16x1xf32>
    %99 = vector.broadcast %98 : vector<16x1xf32> to vector<16x16xf32>
    %100 = arith.subf %96, %99 : vector<16x16xf32>
    %101 = math.exp %100 : vector<16x16xf32>
    %cst_28 = arith.constant dense<0.000000e+00> : vector<16xf32>
    %102 = vector.multi_reduction <add>, %101, %cst_28 [1] : vector<16x16xf32> to vector<16xf32>
    %103 = vector.shape_cast %102 : vector<16xf32> to vector<16x1xf32>
    %104 = tpu.reciprocal %103 {approx = true} : vector<16x1xf32> -> vector<16x1xf32>
    %105 = vector.broadcast %104 : vector<16x1xf32> to vector<16x16xf32>
    %106 = arith.mulf %101, %105 : vector<16x16xf32>
    %107 = arith.truncf %106 : vector<16x16xf32> to vector<16x16xbf16>
    %cst_29 = arith.constant dense<0.000000e+00> : vector<16x8xf32>
    %108 = tpu.matmul %107, %95, %cst_29 {dimension_numbers = #tpu.dot_dimension_numbers<[1], [0], [0], [1], [0, 0, 1, 1], [], []>} : vector<16x16xbf16>, vector<16x8xbf16>, vector<16x8xf32> -> vector<16x8xf32>
    %109 = vector.extract_strided_slice %70 {offsets = [0, 16], sizes = [16, 8], strides = [1, 1]} : vector<16x96xf32> to vector<16x8xf32>
    %110 = arith.truncf %109 : vector<16x8xf32> to vector<16x8xbf16>
    %111 = vector.extract_strided_slice %70 {offsets = [0, 48], sizes = [16, 8], strides = [1, 1]} : vector<16x96xf32> to vector<16x8xf32>
    %112 = arith.truncf %111 : vector<16x8xf32> to vector<16x8xbf16>
    %113 = vector.extract_strided_slice %70 {offsets = [0, 80], sizes = [16, 8], strides = [1, 1]} : vector<16x96xf32> to vector<16x8xf32>
    %114 = arith.truncf %113 : vector<16x8xf32> to vector<16x8xbf16>
    %cst_30 = arith.constant dense<0.000000e+00> : vector<16x16xf32>
    %115 = tpu.matmul %110, %112, %cst_30 {dimension_numbers = #tpu.dot_dimension_numbers<[1], [1], [0], [0], [0, 0, 1, 0], [], []>} : vector<16x8xbf16>, vector<16x8xbf16>, vector<16x16xf32> -> vector<16x16xf32>
    %cst_31 = arith.constant dense<0xFF800000> : vector<16xf32>
    %116 = vector.multi_reduction <maximumf>, %115, %cst_31 [1] : vector<16x16xf32> to vector<16xf32>
    %117 = vector.shape_cast %116 : vector<16xf32> to vector<16x1xf32>
    %118 = vector.broadcast %117 : vector<16x1xf32> to vector<16x16xf32>
    %119 = arith.subf %115, %118 : vector<16x16xf32>
    %120 = math.exp %119 : vector<16x16xf32>
    %cst_32 = arith.constant dense<0.000000e+00> : vector<16xf32>
    %121 = vector.multi_reduction <add>, %120, %cst_32 [1] : vector<16x16xf32> to vector<16xf32>
    %122 = vector.shape_cast %121 : vector<16xf32> to vector<16x1xf32>
    %123 = tpu.reciprocal %122 {approx = true} : vector<16x1xf32> -> vector<16x1xf32>
    %124 = vector.broadcast %123 : vector<16x1xf32> to vector<16x16xf32>
    %125 = arith.mulf %120, %124 : vector<16x16xf32>
    %126 = arith.truncf %125 : vector<16x16xf32> to vector<16x16xbf16>
    %cst_33 = arith.constant dense<0.000000e+00> : vector<16x8xf32>
    %127 = tpu.matmul %126, %114, %cst_33 {dimension_numbers = #tpu.dot_dimension_numbers<[1], [0], [0], [1], [0, 0, 1, 1], [], []>} : vector<16x16xbf16>, vector<16x8xbf16>, vector<16x8xf32> -> vector<16x8xf32>
    %128 = vector.extract_strided_slice %70 {offsets = [0, 24], sizes = [16, 8], strides = [1, 1]} : vector<16x96xf32> to vector<16x8xf32>
    %129 = arith.truncf %128 : vector<16x8xf32> to vector<16x8xbf16>
    %130 = vector.extract_strided_slice %70 {offsets = [0, 56], sizes = [16, 8], strides = [1, 1]} : vector<16x96xf32> to vector<16x8xf32>
    %131 = arith.truncf %130 : vector<16x8xf32> to vector<16x8xbf16>
    %132 = vector.extract_strided_slice %70 {offsets = [0, 88], sizes = [16, 8], strides = [1, 1]} : vector<16x96xf32> to vector<16x8xf32>
    %133 = arith.truncf %132 : vector<16x8xf32> to vector<16x8xbf16>
    %cst_34 = arith.constant dense<0.000000e+00> : vector<16x16xf32>
    %134 = tpu.matmul %129, %131, %cst_34 {dimension_numbers = #tpu.dot_dimension_numbers<[1], [1], [0], [0], [0, 0, 1, 0], [], []>} : vector<16x8xbf16>, vector<16x8xbf16>, vector<16x16xf32> -> vector<16x16xf32>
    %cst_35 = arith.constant dense<0xFF800000> : vector<16xf32>
    %135 = vector.multi_reduction <maximumf>, %134, %cst_35 [1] : vector<16x16xf32> to vector<16xf32>
    %136 = vector.shape_cast %135 : vector<16xf32> to vector<16x1xf32>
    %137 = vector.broadcast %136 : vector<16x1xf32> to vector<16x16xf32>
    %138 = arith.subf %134, %137 : vector<16x16xf32>
    %139 = math.exp %138 : vector<16x16xf32>
    %cst_36 = arith.constant dense<0.000000e+00> : vector<16xf32>
    %140 = vector.multi_reduction <add>, %139, %cst_36 [1] : vector<16x16xf32> to vector<16xf32>
    %141 = vector.shape_cast %140 : vector<16xf32> to vector<16x1xf32>
    %142 = tpu.reciprocal %141 {approx = true} : vector<16x1xf32> -> vector<16x1xf32>
    %143 = vector.broadcast %142 : vector<16x1xf32> to vector<16x16xf32>
    %144 = arith.mulf %139, %143 : vector<16x16xf32>
    %145 = arith.truncf %144 : vector<16x16xf32> to vector<16x16xbf16>
    %cst_37 = arith.constant dense<0.000000e+00> : vector<16x8xf32>
    %146 = tpu.matmul %145, %133, %cst_37 {dimension_numbers = #tpu.dot_dimension_numbers<[1], [0], [0], [1], [0, 0, 1, 1], [], []>} : vector<16x16xbf16>, vector<16x8xbf16>, vector<16x8xf32> -> vector<16x8xf32>
    %147 = tpu.concatenate %89, %108, %127, %146 in 1 : vector<16x8xf32>, vector<16x8xf32>, vector<16x8xf32>, vector<16x8xf32> -> vector<16x32xf32>
    %148 = arith.truncf %147 : vector<16x32xf32> to vector<16x32xbf16>
    %c0_38 = arith.constant 0 : index
    %c0_39 = arith.constant 0 : index
    %c0_40 = arith.constant 0 : index
    %149 = vector.load %arg4[%c0_38, %c0_39, %c0_40] : memref<2x32x32xbf16, #tpu.memory_space<vmem>>, vector<1x32x32xbf16>
    %150 = vector.shape_cast %149 : vector<1x32x32xbf16> to vector<32x32xbf16>
    %cst_41 = arith.constant dense<0.000000e+00> : vector<16x32xf32>
    %151 = tpu.matmul %148, %150, %cst_41 {dimension_numbers = #tpu.dot_dimension_numbers<[1], [0], [0], [1], [0, 0, 1, 1], [], []>} : vector<16x32xbf16>, vector<32x32xbf16>, vector<16x32xf32> -> vector<16x32xf32>
    %152 = arith.addf %32, %151 : vector<16x32xf32>
    %153 = vector.broadcast %38 : vector<1x32xf32> to vector<16x32xf32>
    %154 = arith.addf %152, %153 : vector<16x32xf32>
    %cst_42 = arith.constant dense<0.000000e+00> : vector<16xf32>
    %155 = vector.multi_reduction <add>, %154, %cst_42 [1] : vector<16x32xf32> to vector<16xf32>
    %156 = vector.shape_cast %155 : vector<16xf32> to vector<16x1xf32>
    %cst_43 = arith.constant 3.200000e+01 : f32
    %157 = vector.broadcast %cst_43 : f32 to vector<16x1xf32>
    %158 = arith.divf %156, %157 : vector<16x1xf32>
    %159 = vector.broadcast %158 : vector<16x1xf32> to vector<16x32xf32>
    %160 = arith.subf %154, %159 : vector<16x32xf32>
    %161 = arith.mulf %160, %160 : vector<16x32xf32>
    %cst_44 = arith.constant dense<0.000000e+00> : vector<16xf32>
    %162 = vector.multi_reduction <add>, %161, %cst_44 [1] : vector<16x32xf32> to vector<16xf32>
    %163 = vector.shape_cast %162 : vector<16xf32> to vector<16x1xf32>
    %cst_45 = arith.constant 3.200000e+01 : f32
    %164 = vector.broadcast %cst_45 : f32 to vector<16x1xf32>
    %165 = arith.divf %163, %164 : vector<16x1xf32>
    %166 = vector.broadcast %158 : vector<16x1xf32> to vector<16x32xf32>
    %167 = arith.subf %154, %166 : vector<16x32xf32>
    %cst_46 = arith.constant 9.99999974E-6 : f32
    %168 = vector.broadcast %cst_46 : f32 to vector<16x1xf32>
    %169 = arith.addf %165, %168 : vector<16x1xf32>
    %170 = math.rsqrt %169 : vector<16x1xf32>
    %171 = vector.broadcast %170 : vector<16x1xf32> to vector<16x32xf32>
    %172 = arith.mulf %167, %171 : vector<16x32xf32>
    %173 = vector.broadcast %39 : vector<1x32xf32> to vector<16x32xf32>
    %174 = arith.mulf %172, %173 : vector<16x32xf32>
    %175 = vector.broadcast %40 : vector<1x32xf32> to vector<16x32xf32>
    %176 = arith.addf %174, %175 : vector<16x32xf32>
    %177 = arith.truncf %176 : vector<16x32xf32> to vector<16x32xbf16>
    %c0_47 = arith.constant 0 : index
    %c0_48 = arith.constant 0 : index
    %c0_49 = arith.constant 0 : index
    %178 = vector.load %arg5[%c0_47, %c0_48, %c0_49] : memref<2x32x64xbf16, #tpu.memory_space<vmem>>, vector<1x32x64xbf16>
    %179 = vector.shape_cast %178 : vector<1x32x64xbf16> to vector<32x64xbf16>
    %cst_50 = arith.constant dense<0.000000e+00> : vector<16x64xf32>
    %180 = tpu.matmul %177, %179, %cst_50 {dimension_numbers = #tpu.dot_dimension_numbers<[1], [0], [0], [1], [0, 0, 1, 1], [], []>} : vector<16x32xbf16>, vector<32x64xbf16>, vector<16x64xf32> -> vector<16x64xf32>
    %181 = vector.broadcast %41 : vector<1x64xf32> to vector<16x64xf32>
    %182 = arith.addf %180, %181 : vector<16x64xf32>
    %183 = arith.mulf %182, %182 : vector<16x64xf32>
    %184 = arith.mulf %182, %183 : vector<16x64xf32>
    %cst_51 = arith.constant 4.471500e-02 : f32
    %185 = vector.broadcast %cst_51 : f32 to vector<16x64xf32>
    %186 = arith.mulf %185, %184 : vector<16x64xf32>
    %187 = arith.addf %182, %186 : vector<16x64xf32>
    %cst_52 = arith.constant 0.797884583 : f32
    %188 = vector.broadcast %cst_52 : f32 to vector<16x64xf32>
    %189 = arith.mulf %188, %187 : vector<16x64xf32>
    %190 = math.tanh %189 : vector<16x64xf32>
    %cst_53 = arith.constant 1.000000e+00 : f32
    %191 = vector.broadcast %cst_53 : f32 to vector<16x64xf32>
    %192 = arith.addf %191, %190 : vector<16x64xf32>
    %cst_54 = arith.constant 5.000000e-01 : f32
    %193 = vector.broadcast %cst_54 : f32 to vector<16x64xf32>
    %194 = arith.mulf %193, %192 : vector<16x64xf32>
    %195 = arith.mulf %182, %194 : vector<16x64xf32>
    %196 = arith.truncf %195 : vector<16x64xf32> to vector<16x64xbf16>
    %c0_55 = arith.constant 0 : index
    %c0_56 = arith.constant 0 : index
    %c0_57 = arith.constant 0 : index
    %197 = vector.load %arg6[%c0_55, %c0_56, %c0_57] : memref<2x64x32xbf16, #tpu.memory_space<vmem>>, vector<1x64x32xbf16>
    %198 = vector.shape_cast %197 : vector<1x64x32xbf16> to vector<64x32xbf16>
    %cst_58 = arith.constant dense<0.000000e+00> : vector<16x32xf32>
    %199 = tpu.matmul %196, %198, %cst_58 {dimension_numbers = #tpu.dot_dimension_numbers<[1], [0], [0], [1], [0, 0, 1, 1], [], []>} : vector<16x64xbf16>, vector<64x32xbf16>, vector<16x32xf32> -> vector<16x32xf32>
    %200 = arith.addf %154, %199 : vector<16x32xf32>
    %201 = vector.broadcast %42 : vector<1x32xf32> to vector<16x32xf32>
    %202 = arith.addf %200, %201 : vector<16x32xf32>
    %c1 = arith.constant 1 : index
    %c0_59 = arith.constant 0 : index
    %c0_60 = arith.constant 0 : index
    %203 = vector.load %arg7[%c1, %c0_59, %c0_60] : memref<2x8x128xf32, #tpu.memory_space<vmem>>, vector<1x8x128xf32>
    %204 = vector.shape_cast %203 : vector<1x8x128xf32> to vector<8x128xf32>
    %205 = vector.extract_strided_slice %204 {offsets = [0, 0], sizes = [1, 32], strides = [1, 1]} : vector<8x128xf32> to vector<1x32xf32>
    %206 = vector.extract_strided_slice %204 {offsets = [1, 0], sizes = [1, 32], strides = [1, 1]} : vector<8x128xf32> to vector<1x32xf32>
    %207 = vector.extract_strided_slice %204 {offsets = [2, 0], sizes = [1, 96], strides = [1, 1]} : vector<8x128xf32> to vector<1x96xf32>
    %208 = vector.extract_strided_slice %204 {offsets = [3, 0], sizes = [1, 32], strides = [1, 1]} : vector<8x128xf32> to vector<1x32xf32>
    %209 = vector.extract_strided_slice %204 {offsets = [4, 0], sizes = [1, 32], strides = [1, 1]} : vector<8x128xf32> to vector<1x32xf32>
    %210 = vector.extract_strided_slice %204 {offsets = [5, 0], sizes = [1, 32], strides = [1, 1]} : vector<8x128xf32> to vector<1x32xf32>
    %211 = vector.extract_strided_slice %204 {offsets = [6, 0], sizes = [1, 64], strides = [1, 1]} : vector<8x128xf32> to vector<1x64xf32>
    %212 = vector.extract_strided_slice %204 {offsets = [7, 0], sizes = [1, 32], strides = [1, 1]} : vector<8x128xf32> to vector<1x32xf32>
    %cst_61 = arith.constant dense<0.000000e+00> : vector<16xf32>
    %213 = vector.multi_reduction <add>, %202, %cst_61 [1] : vector<16x32xf32> to vector<16xf32>
    %214 = vector.shape_cast %213 : vector<16xf32> to vector<16x1xf32>
    %cst_62 = arith.constant 3.200000e+01 : f32
    %215 = vector.broadcast %cst_62 : f32 to vector<16x1xf32>
    %216 = arith.divf %214, %215 : vector<16x1xf32>
    %217 = vector.broadcast %216 : vector<16x1xf32> to vector<16x32xf32>
    %218 = arith.subf %202, %217 : vector<16x32xf32>
    %219 = arith.mulf %218, %218 : vector<16x32xf32>
    %cst_63 = arith.constant dense<0.000000e+00> : vector<16xf32>
    %220 = vector.multi_reduction <add>, %219, %cst_63 [1] : vector<16x32xf32> to vector<16xf32>
    %221 = vector.shape_cast %220 : vector<16xf32> to vector<16x1xf32>
    %cst_64 = arith.constant 3.200000e+01 : f32
    %222 = vector.broadcast %cst_64 : f32 to vector<16x1xf32>
    %223 = arith.divf %221, %222 : vector<16x1xf32>
    %224 = vector.broadcast %216 : vector<16x1xf32> to vector<16x32xf32>
    %225 = arith.subf %202, %224 : vector<16x32xf32>
    %cst_65 = arith.constant 9.99999974E-6 : f32
    %226 = vector.broadcast %cst_65 : f32 to vector<16x1xf32>
    %227 = arith.addf %223, %226 : vector<16x1xf32>
    %228 = math.rsqrt %227 : vector<16x1xf32>
    %229 = vector.broadcast %228 : vector<16x1xf32> to vector<16x32xf32>
    %230 = arith.mulf %225, %229 : vector<16x32xf32>
    %231 = vector.broadcast %205 : vector<1x32xf32> to vector<16x32xf32>
    %232 = arith.mulf %230, %231 : vector<16x32xf32>
    %233 = vector.broadcast %206 : vector<1x32xf32> to vector<16x32xf32>
    %234 = arith.addf %232, %233 : vector<16x32xf32>
    %235 = arith.truncf %234 : vector<16x32xf32> to vector<16x32xbf16>
    %c1_66 = arith.constant 1 : index
    %c0_67 = arith.constant 0 : index
    %c0_68 = arith.constant 0 : index
    %236 = vector.load %arg3[%c1_66, %c0_67, %c0_68] : memref<2x32x96xbf16, #tpu.memory_space<vmem>>, vector<1x32x96xbf16>
    %237 = vector.shape_cast %236 : vector<1x32x96xbf16> to vector<32x96xbf16>
    %cst_69 = arith.constant dense<0.000000e+00> : vector<16x96xf32>
    %238 = tpu.matmul %235, %237, %cst_69 {dimension_numbers = #tpu.dot_dimension_numbers<[1], [0], [0], [1], [0, 0, 1, 1], [], []>} : vector<16x32xbf16>, vector<32x96xbf16>, vector<16x96xf32> -> vector<16x96xf32>
    %239 = vector.broadcast %207 : vector<1x96xf32> to vector<16x96xf32>
    %240 = arith.addf %238, %239 : vector<16x96xf32>
    %241 = vector.extract_strided_slice %240 {offsets = [0, 0], sizes = [16, 8], strides = [1, 1]} : vector<16x96xf32> to vector<16x8xf32>
    %242 = arith.truncf %241 : vector<16x8xf32> to vector<16x8xbf16>
    %243 = vector.extract_strided_slice %240 {offsets = [0, 32], sizes = [16, 8], strides = [1, 1]} : vector<16x96xf32> to vector<16x8xf32>
    %244 = arith.truncf %243 : vector<16x8xf32> to vector<16x8xbf16>
    %245 = vector.extract_strided_slice %240 {offsets = [0, 64], sizes = [16, 8], strides = [1, 1]} : vector<16x96xf32> to vector<16x8xf32>
    %246 = arith.truncf %245 : vector<16x8xf32> to vector<16x8xbf16>
    %cst_70 = arith.constant dense<0.000000e+00> : vector<16x16xf32>
    %247 = tpu.matmul %242, %244, %cst_70 {dimension_numbers = #tpu.dot_dimension_numbers<[1], [1], [0], [0], [0, 0, 1, 0], [], []>} : vector<16x8xbf16>, vector<16x8xbf16>, vector<16x16xf32> -> vector<16x16xf32>
    %cst_71 = arith.constant dense<0xFF800000> : vector<16xf32>
    %248 = vector.multi_reduction <maximumf>, %247, %cst_71 [1] : vector<16x16xf32> to vector<16xf32>
    %249 = vector.shape_cast %248 : vector<16xf32> to vector<16x1xf32>
    %250 = vector.broadcast %249 : vector<16x1xf32> to vector<16x16xf32>
    %251 = arith.subf %247, %250 : vector<16x16xf32>
    %252 = math.exp %251 : vector<16x16xf32>
    %cst_72 = arith.constant dense<0.000000e+00> : vector<16xf32>
    %253 = vector.multi_reduction <add>, %252, %cst_72 [1] : vector<16x16xf32> to vector<16xf32>
    %254 = vector.shape_cast %253 : vector<16xf32> to vector<16x1xf32>
    %255 = tpu.reciprocal %254 {approx = true} : vector<16x1xf32> -> vector<16x1xf32>
    %256 = vector.broadcast %255 : vector<16x1xf32> to vector<16x16xf32>
    %257 = arith.mulf %252, %256 : vector<16x16xf32>
    %258 = arith.truncf %257 : vector<16x16xf32> to vector<16x16xbf16>
    %cst_73 = arith.constant dense<0.000000e+00> : vector<16x8xf32>
    %259 = tpu.matmul %258, %246, %cst_73 {dimension_numbers = #tpu.dot_dimension_numbers<[1], [0], [0], [1], [0, 0, 1, 1], [], []>} : vector<16x16xbf16>, vector<16x8xbf16>, vector<16x8xf32> -> vector<16x8xf32>
    %260 = vector.extract_strided_slice %240 {offsets = [0, 8], sizes = [16, 8], strides = [1, 1]} : vector<16x96xf32> to vector<16x8xf32>
    %261 = arith.truncf %260 : vector<16x8xf32> to vector<16x8xbf16>
    %262 = vector.extract_strided_slice %240 {offsets = [0, 40], sizes = [16, 8], strides = [1, 1]} : vector<16x96xf32> to vector<16x8xf32>
    %263 = arith.truncf %262 : vector<16x8xf32> to vector<16x8xbf16>
    %264 = vector.extract_strided_slice %240 {offsets = [0, 72], sizes = [16, 8], strides = [1, 1]} : vector<16x96xf32> to vector<16x8xf32>
    %265 = arith.truncf %264 : vector<16x8xf32> to vector<16x8xbf16>
    %cst_74 = arith.constant dense<0.000000e+00> : vector<16x16xf32>
    %266 = tpu.matmul %261, %263, %cst_74 {dimension_numbers = #tpu.dot_dimension_numbers<[1], [1], [0], [0], [0, 0, 1, 0], [], []>} : vector<16x8xbf16>, vector<16x8xbf16>, vector<16x16xf32> -> vector<16x16xf32>
    %cst_75 = arith.constant dense<0xFF800000> : vector<16xf32>
    %267 = vector.multi_reduction <maximumf>, %266, %cst_75 [1] : vector<16x16xf32> to vector<16xf32>
    %268 = vector.shape_cast %267 : vector<16xf32> to vector<16x1xf32>
    %269 = vector.broadcast %268 : vector<16x1xf32> to vector<16x16xf32>
    %270 = arith.subf %266, %269 : vector<16x16xf32>
    %271 = math.exp %270 : vector<16x16xf32>
    %cst_76 = arith.constant dense<0.000000e+00> : vector<16xf32>
    %272 = vector.multi_reduction <add>, %271, %cst_76 [1] : vector<16x16xf32> to vector<16xf32>
    %273 = vector.shape_cast %272 : vector<16xf32> to vector<16x1xf32>
    %274 = tpu.reciprocal %273 {approx = true} : vector<16x1xf32> -> vector<16x1xf32>
    %275 = vector.broadcast %274 : vector<16x1xf32> to vector<16x16xf32>
    %276 = arith.mulf %271, %275 : vector<16x16xf32>
    %277 = arith.truncf %276 : vector<16x16xf32> to vector<16x16xbf16>
    %cst_77 = arith.constant dense<0.000000e+00> : vector<16x8xf32>
    %278 = tpu.matmul %277, %265, %cst_77 {dimension_numbers = #tpu.dot_dimension_numbers<[1], [0], [0], [1], [0, 0, 1, 1], [], []>} : vector<16x16xbf16>, vector<16x8xbf16>, vector<16x8xf32> -> vector<16x8xf32>
    %279 = vector.extract_strided_slice %240 {offsets = [0, 16], sizes = [16, 8], strides = [1, 1]} : vector<16x96xf32> to vector<16x8xf32>
    %280 = arith.truncf %279 : vector<16x8xf32> to vector<16x8xbf16>
    %281 = vector.extract_strided_slice %240 {offsets = [0, 48], sizes = [16, 8], strides = [1, 1]} : vector<16x96xf32> to vector<16x8xf32>
    %282 = arith.truncf %281 : vector<16x8xf32> to vector<16x8xbf16>
    %283 = vector.extract_strided_slice %240 {offsets = [0, 80], sizes = [16, 8], strides = [1, 1]} : vector<16x96xf32> to vector<16x8xf32>
    %284 = arith.truncf %283 : vector<16x8xf32> to vector<16x8xbf16>
    %cst_78 = arith.constant dense<0.000000e+00> : vector<16x16xf32>
    %285 = tpu.matmul %280, %282, %cst_78 {dimension_numbers = #tpu.dot_dimension_numbers<[1], [1], [0], [0], [0, 0, 1, 0], [], []>} : vector<16x8xbf16>, vector<16x8xbf16>, vector<16x16xf32> -> vector<16x16xf32>
    %cst_79 = arith.constant dense<0xFF800000> : vector<16xf32>
    %286 = vector.multi_reduction <maximumf>, %285, %cst_79 [1] : vector<16x16xf32> to vector<16xf32>
    %287 = vector.shape_cast %286 : vector<16xf32> to vector<16x1xf32>
    %288 = vector.broadcast %287 : vector<16x1xf32> to vector<16x16xf32>
    %289 = arith.subf %285, %288 : vector<16x16xf32>
    %290 = math.exp %289 : vector<16x16xf32>
    %cst_80 = arith.constant dense<0.000000e+00> : vector<16xf32>
    %291 = vector.multi_reduction <add>, %290, %cst_80 [1] : vector<16x16xf32> to vector<16xf32>
    %292 = vector.shape_cast %291 : vector<16xf32> to vector<16x1xf32>
    %293 = tpu.reciprocal %292 {approx = true} : vector<16x1xf32> -> vector<16x1xf32>
    %294 = vector.broadcast %293 : vector<16x1xf32> to vector<16x16xf32>
    %295 = arith.mulf %290, %294 : vector<16x16xf32>
    %296 = arith.truncf %295 : vector<16x16xf32> to vector<16x16xbf16>
    %cst_81 = arith.constant dense<0.000000e+00> : vector<16x8xf32>
    %297 = tpu.matmul %296, %284, %cst_81 {dimension_numbers = #tpu.dot_dimension_numbers<[1], [0], [0], [1], [0, 0, 1, 1], [], []>} : vector<16x16xbf16>, vector<16x8xbf16>, vector<16x8xf32> -> vector<16x8xf32>
    %298 = vector.extract_strided_slice %240 {offsets = [0, 24], sizes = [16, 8], strides = [1, 1]} : vector<16x96xf32> to vector<16x8xf32>
    %299 = arith.truncf %298 : vector<16x8xf32> to vector<16x8xbf16>
    %300 = vector.extract_strided_slice %240 {offsets = [0, 56], sizes = [16, 8], strides = [1, 1]} : vector<16x96xf32> to vector<16x8xf32>
    %301 = arith.truncf %300 : vector<16x8xf32> to vector<16x8xbf16>
    %302 = vector.extract_strided_slice %240 {offsets = [0, 88], sizes = [16, 8], strides = [1, 1]} : vector<16x96xf32> to vector<16x8xf32>
    %303 = arith.truncf %302 : vector<16x8xf32> to vector<16x8xbf16>
    %cst_82 = arith.constant dense<0.000000e+00> : vector<16x16xf32>
    %304 = tpu.matmul %299, %301, %cst_82 {dimension_numbers = #tpu.dot_dimension_numbers<[1], [1], [0], [0], [0, 0, 1, 0], [], []>} : vector<16x8xbf16>, vector<16x8xbf16>, vector<16x16xf32> -> vector<16x16xf32>
    %cst_83 = arith.constant dense<0xFF800000> : vector<16xf32>
    %305 = vector.multi_reduction <maximumf>, %304, %cst_83 [1] : vector<16x16xf32> to vector<16xf32>
    %306 = vector.shape_cast %305 : vector<16xf32> to vector<16x1xf32>
    %307 = vector.broadcast %306 : vector<16x1xf32> to vector<16x16xf32>
    %308 = arith.subf %304, %307 : vector<16x16xf32>
    %309 = math.exp %308 : vector<16x16xf32>
    %cst_84 = arith.constant dense<0.000000e+00> : vector<16xf32>
    %310 = vector.multi_reduction <add>, %309, %cst_84 [1] : vector<16x16xf32> to vector<16xf32>
    %311 = vector.shape_cast %310 : vector<16xf32> to vector<16x1xf32>
    %312 = tpu.reciprocal %311 {approx = true} : vector<16x1xf32> -> vector<16x1xf32>
    %313 = vector.broadcast %312 : vector<16x1xf32> to vector<16x16xf32>
    %314 = arith.mulf %309, %313 : vector<16x16xf32>
    %315 = arith.truncf %314 : vector<16x16xf32> to vector<16x16xbf16>
    %cst_85 = arith.constant dense<0.000000e+00> : vector<16x8xf32>
    %316 = tpu.matmul %315, %303, %cst_85 {dimension_numbers = #tpu.dot_dimension_numbers<[1], [0], [0], [1], [0, 0, 1, 1], [], []>} : vector<16x16xbf16>, vector<16x8xbf16>, vector<16x8xf32> -> vector<16x8xf32>
    %317 = tpu.concatenate %259, %278, %297, %316 in 1 : vector<16x8xf32>, vector<16x8xf32>, vector<16x8xf32>, vector<16x8xf32> -> vector<16x32xf32>
    %318 = arith.truncf %317 : vector<16x32xf32> to vector<16x32xbf16>
    %c1_86 = arith.constant 1 : index
    %c0_87 = arith.constant 0 : index
    %c0_88 = arith.constant 0 : index
    %319 = vector.load %arg4[%c1_86, %c0_87, %c0_88] : memref<2x32x32xbf16, #tpu.memory_space<vmem>>, vector<1x32x32xbf16>
    %320 = vector.shape_cast %319 : vector<1x32x32xbf16> to vector<32x32xbf16>
    %cst_89 = arith.constant dense<0.000000e+00> : vector<16x32xf32>
    %321 = tpu.matmul %318, %320, %cst_89 {dimension_numbers = #tpu.dot_dimension_numbers<[1], [0], [0], [1], [0, 0, 1, 1], [], []>} : vector<16x32xbf16>, vector<32x32xbf16>, vector<16x32xf32> -> vector<16x32xf32>
    %322 = arith.addf %202, %321 : vector<16x32xf32>
    %323 = vector.broadcast %208 : vector<1x32xf32> to vector<16x32xf32>
    %324 = arith.addf %322, %323 : vector<16x32xf32>
    %cst_90 = arith.constant dense<0.000000e+00> : vector<16xf32>
    %325 = vector.multi_reduction <add>, %324, %cst_90 [1] : vector<16x32xf32> to vector<16xf32>
    %326 = vector.shape_cast %325 : vector<16xf32> to vector<16x1xf32>
    %cst_91 = arith.constant 3.200000e+01 : f32
    %327 = vector.broadcast %cst_91 : f32 to vector<16x1xf32>
    %328 = arith.divf %326, %327 : vector<16x1xf32>
    %329 = vector.broadcast %328 : vector<16x1xf32> to vector<16x32xf32>
    %330 = arith.subf %324, %329 : vector<16x32xf32>
    %331 = arith.mulf %330, %330 : vector<16x32xf32>
    %cst_92 = arith.constant dense<0.000000e+00> : vector<16xf32>
    %332 = vector.multi_reduction <add>, %331, %cst_92 [1] : vector<16x32xf32> to vector<16xf32>
    %333 = vector.shape_cast %332 : vector<16xf32> to vector<16x1xf32>
    %cst_93 = arith.constant 3.200000e+01 : f32
    %334 = vector.broadcast %cst_93 : f32 to vector<16x1xf32>
    %335 = arith.divf %333, %334 : vector<16x1xf32>
    %336 = vector.broadcast %328 : vector<16x1xf32> to vector<16x32xf32>
    %337 = arith.subf %324, %336 : vector<16x32xf32>
    %cst_94 = arith.constant 9.99999974E-6 : f32
    %338 = vector.broadcast %cst_94 : f32 to vector<16x1xf32>
    %339 = arith.addf %335, %338 : vector<16x1xf32>
    %340 = math.rsqrt %339 : vector<16x1xf32>
    %341 = vector.broadcast %340 : vector<16x1xf32> to vector<16x32xf32>
    %342 = arith.mulf %337, %341 : vector<16x32xf32>
    %343 = vector.broadcast %209 : vector<1x32xf32> to vector<16x32xf32>
    %344 = arith.mulf %342, %343 : vector<16x32xf32>
    %345 = vector.broadcast %210 : vector<1x32xf32> to vector<16x32xf32>
    %346 = arith.addf %344, %345 : vector<16x32xf32>
    %347 = arith.truncf %346 : vector<16x32xf32> to vector<16x32xbf16>
    %c1_95 = arith.constant 1 : index
    %c0_96 = arith.constant 0 : index
    %c0_97 = arith.constant 0 : index
    %348 = vector.load %arg5[%c1_95, %c0_96, %c0_97] : memref<2x32x64xbf16, #tpu.memory_space<vmem>>, vector<1x32x64xbf16>
    %349 = vector.shape_cast %348 : vector<1x32x64xbf16> to vector<32x64xbf16>
    %cst_98 = arith.constant dense<0.000000e+00> : vector<16x64xf32>
    %350 = tpu.matmul %347, %349, %cst_98 {dimension_numbers = #tpu.dot_dimension_numbers<[1], [0], [0], [1], [0, 0, 1, 1], [], []>} : vector<16x32xbf16>, vector<32x64xbf16>, vector<16x64xf32> -> vector<16x64xf32>
    %351 = vector.broadcast %211 : vector<1x64xf32> to vector<16x64xf32>
    %352 = arith.addf %350, %351 : vector<16x64xf32>
    %353 = arith.mulf %352, %352 : vector<16x64xf32>
    %354 = arith.mulf %352, %353 : vector<16x64xf32>
    %cst_99 = arith.constant 4.471500e-02 : f32
    %355 = vector.broadcast %cst_99 : f32 to vector<16x64xf32>
    %356 = arith.mulf %355, %354 : vector<16x64xf32>
    %357 = arith.addf %352, %356 : vector<16x64xf32>
    %cst_100 = arith.constant 0.797884583 : f32
    %358 = vector.broadcast %cst_100 : f32 to vector<16x64xf32>
    %359 = arith.mulf %358, %357 : vector<16x64xf32>
    %360 = math.tanh %359 : vector<16x64xf32>
    %cst_101 = arith.constant 1.000000e+00 : f32
    %361 = vector.broadcast %cst_101 : f32 to vector<16x64xf32>
    %362 = arith.addf %361, %360 : vector<16x64xf32>
    %cst_102 = arith.constant 5.000000e-01 : f32
    %363 = vector.broadcast %cst_102 : f32 to vector<16x64xf32>
    %364 = arith.mulf %363, %362 : vector<16x64xf32>
    %365 = arith.mulf %352, %364 : vector<16x64xf32>
    %366 = arith.truncf %365 : vector<16x64xf32> to vector<16x64xbf16>
    %c1_103 = arith.constant 1 : index
    %c0_104 = arith.constant 0 : index
    %c0_105 = arith.constant 0 : index
    %367 = vector.load %arg6[%c1_103, %c0_104, %c0_105] : memref<2x64x32xbf16, #tpu.memory_space<vmem>>, vector<1x64x32xbf16>
    %368 = vector.shape_cast %367 : vector<1x64x32xbf16> to vector<64x32xbf16>
    %cst_106 = arith.constant dense<0.000000e+00> : vector<16x32xf32>
    %369 = tpu.matmul %366, %368, %cst_106 {dimension_numbers = #tpu.dot_dimension_numbers<[1], [0], [0], [1], [0, 0, 1, 1], [], []>} : vector<16x64xbf16>, vector<64x32xbf16>, vector<16x32xf32> -> vector<16x32xf32>
    %370 = arith.addf %324, %369 : vector<16x32xf32>
    %371 = vector.broadcast %212 : vector<1x32xf32> to vector<16x32xf32>
    %372 = arith.addf %370, %371 : vector<16x32xf32>
    %cst_107 = arith.constant dense<0.000000e+00> : vector<16xf32>
    %373 = vector.multi_reduction <add>, %372, %cst_107 [1] : vector<16x32xf32> to vector<16xf32>
    %374 = vector.shape_cast %373 : vector<16xf32> to vector<16x1xf32>
    %cst_108 = arith.constant 3.200000e+01 : f32
    %375 = vector.broadcast %cst_108 : f32 to vector<16x1xf32>
    %376 = arith.divf %374, %375 : vector<16x1xf32>
    %377 = vector.broadcast %376 : vector<16x1xf32> to vector<16x32xf32>
    %378 = arith.subf %372, %377 : vector<16x32xf32>
    %379 = arith.mulf %378, %378 : vector<16x32xf32>
    %cst_109 = arith.constant dense<0.000000e+00> : vector<16xf32>
    %380 = vector.multi_reduction <add>, %379, %cst_109 [1] : vector<16x32xf32> to vector<16xf32>
    %381 = vector.shape_cast %380 : vector<16xf32> to vector<16x1xf32>
    %cst_110 = arith.constant 3.200000e+01 : f32
    %382 = vector.broadcast %cst_110 : f32 to vector<16x1xf32>
    %383 = arith.divf %381, %382 : vector<16x1xf32>
    %384 = vector.broadcast %376 : vector<16x1xf32> to vector<16x32xf32>
    %385 = arith.subf %372, %384 : vector<16x32xf32>
    %cst_111 = arith.constant 9.99999974E-6 : f32
    %386 = vector.broadcast %cst_111 : f32 to vector<16x1xf32>
    %387 = arith.addf %383, %386 : vector<16x1xf32>
    %388 = math.rsqrt %387 : vector<16x1xf32>
    %389 = vector.broadcast %388 : vector<16x1xf32> to vector<16x32xf32>
    %390 = arith.mulf %385, %389 : vector<16x32xf32>
    %391 = vector.broadcast %4 : vector<1x32xf32> to vector<16x32xf32>
    %392 = arith.mulf %390, %391 : vector<16x32xf32>
    %393 = vector.broadcast %5 : vector<1x32xf32> to vector<16x32xf32>
    %394 = arith.addf %392, %393 : vector<16x32xf32>
    %c0_112 = arith.constant 0 : index
    %c0_113 = arith.constant 0 : index
    %395 = vector.load %arg9[%c0_112, %c0_113] : memref<16x32xf32, #tpu.memory_space<vmem>>, vector<16x32xf32>
    tpu.vector_store %arg9[%c0_112, %c0_113], %394 {strides = array<i32>} : memref<16x32xf32, #tpu.memory_space<vmem>>, vector<16x32xf32>,
    return
  }
  func.func @transform_0(%arg0: i32) -> (i32, i32) {
    %c0_i32 = arith.constant 0 : i32
    %c0_i32_0 = arith.constant 0 : i32
    return %arg0, %c0_i32 : i32, i32
  }
  func.func @transform_1(%arg0: i32) -> (i32, i32) {
    %c0_i32 = arith.constant 0 : i32
    %c0_i32_0 = arith.constant 0 : i32
    %c0_i32_1 = arith.constant 0 : i32
    return %c0_i32, %c0_i32_0 : i32, i32
  }
  func.func @transform_2(%arg0: i32) -> (i32, i32, i32) {
    %c0_i32 = arith.constant 0 : i32
    %c0_i32_0 = arith.constant 0 : i32
    %c0_i32_1 = arith.constant 0 : i32
    %c0_i32_2 = arith.constant 0 : i32
    return %c0_i32, %c0_i32_0, %c0_i32_1 : i32, i32, i32
  }
  func.func @transform_3(%arg0: i32) -> (i32, i32, i32) {
    %c0_i32 = arith.constant 0 : i32
    %c0_i32_0 = arith.constant 0 : i32
    %c0_i32_1 = arith.constant 0 : i32
    %c0_i32_2 = arith.constant 0 : i32
    return %c0_i32, %c0_i32_0, %c0_i32_1 : i32, i32, i32
  }
  func.func @transform_4(%arg0: i32) -> (i32, i32, i32) {
    %c0_i32 = arith.constant 0 : i32
    %c0_i32_0 = arith.constant 0 : i32
    %c0_i32_1 = arith.constant 0 : i32
    %c0_i32_2 = arith.constant 0 : i32
    return %c0_i32, %c0_i32_0, %c0_i32_1 : i32, i32, i32
  }
  func.func @transform_5(%arg0: i32) -> (i32, i32, i32) {
    %c0_i32 = arith.constant 0 : i32
    %c0_i32_0 = arith.constant 0 : i32
    %c0_i32_1 = arith.constant 0 : i32
    %c0_i32_2 = arith.constant 0 : i32
    return %c0_i32, %c0_i32_0, %c0_i32_1 : i32, i32, i32
  }
  func.func @transform_6(%arg0: i32) -> (i32, i32, i32) {
    %c0_i32 = arith.constant 0 : i32
    %c0_i32_0 = arith.constant 0 : i32
    %c0_i32_1 = arith.constant 0 : i32
    %c0_i32_2 = arith.constant 0 : i32
    return %c0_i32, %c0_i32_0, %c0_i32_1 : i32, i32, i32
  }
  func.func @transform_7(%arg0: i32) -> (i32, i32) {
    %c0_i32 = arith.constant 0 : i32
    %c0_i32_0 = arith.constant 0 : i32
    %c0_i32_1 = arith.constant 0 : i32
    return %c0_i32, %c0_i32_0 : i32, i32
  }
  func.func @transform_8(%arg0: i32) -> (i32, i32) {
    %c0_i32 = arith.constant 0 : i32
    %c0_i32_0 = arith.constant 0 : i32
    return %arg0, %c0_i32 : i32, i32
  }
}

</mosaic_0001>

<bundles_post_ra>
// kernel: tpu_custom_call.1
= control target key start
LH: loop header
LB: loop body
LE: loop exit
PB: predicated region body
PF: predicated region fallthrough
CT: control target
= control target key end

     0   :  { %13 = vsyncpa [#allocation3], 0  ;;  %s2763_s0 = inlined_call_operand.vmem [shape: bf16[32,144], index: 0, kind: input, shape index: {}]   ;;  %s2764_s1 = inlined_call_operand.vmem [shape: bf16[144,32], index: 1, kind: input, shape index: {}]   ;;  %s2765_s2 = inlined_call_operand.vmem [shape: bf16[2,32,96], index: 2, kind: input, shape index: {}]   ;;  %s2766_s3 = inlined_call_operand.vmem [shape: bf16[2,32,32], index: 3, kind: input, shape index: {}]   ;;  %s2767_s4 = inlined_call_operand.vmem [shape: bf16[2,32,64], index: 4, kind: input, shape index: {}]   ;;  %s2768_s5 = inlined_call_operand.vmem [shape: bf16[2,64,32], index: 5, kind: input, shape index: {}]   ;;  %s2769_s6 = inlined_call_operand.vmem [shape: f32[2,8,128], index: 6, kind: input, shape index: {}]   ;;  %s2770_s7 = inlined_call_operand.vmem [shape: f32[5,128], index: 7, kind: input, shape index: {}]   ;;  %s2771_s8 = inlined_call_operand.hbm [shape: f32[32,32], index: 8, kind: output, shape index: {}]  }
   0x1   :  { %15 = vsyncpa [#allocation3 + $0x1], 0  ;;  %s2311_s27 = smov 0   ;;  %s2313_s28 = smov 0  }
   0x2   :  { %s2315_s29 = smov 0   ;;  %s2317_s30 = smov 0  }
   0x3 LB: > { %s2332_s9 = sadd.s32 4294967295, %s2248_s30   ;;  %s1786_s10 = sadd.s32 4294967294, %s2248_s30   ;;  %s2248_s30 = sphi %s2317_s30, %s2796_s30   ;;  %s2244_s29 = sphi %s2315_s29, %s2795_s29   ;;  %s2240_s28 = sphi %s2313_s28, %s2794_s28   ;;  %s2236_s27 = sphi %s2311_s27, %s2793_s27  }
   0x4   : > { %s2336_s11 = sadd.s32 1, %s2248_s30   ;;  %s201_s12 = sadd.s32 1, %s2244_s29 }
   0x5   : > { %s198_s13 = ssub.s32 %s2248_s30, %s2336_s11  ;;  %p211_p0 = scmp.ne.s32.totalorder %s2244_s29, %s2240_s28 }
   0x6   : > { %p199_p1 = scmp.eq.s32.totalorder %s198_s13, 0  ;;  %p212_p2 = scmp.eq.s32.totalorder %s2332_s9, 1 }
   0x7   : > { %p217_p3 = scmp.ne.s32.totalorder %s2240_s28, %s2236_s27  ;;  %p218_p4 = scmp.eq.s32.totalorder %s1786_s10, 1 }
   0x8   : > { %s2347_s14 = scalar_select %p199_p1, %s2244_s29, %s201_s12  }
   0x9   : > { %p2349_p5 = por %p212_p2, %p211_p0  ;;  %p2353_p6 = por %p218_p4, %p217_p3 }
   0xa   : > { %p1789_p7 = scmp.ge.s32.totalorder %s2248_s30, 1  ;;  %p267_p8 = scmp.lt.s32.totalorder %s2248_s30, 3 }
   0xc   : > { %p268_p9 = pnand %p1789_p7, %p267_p8 }
   0xd   : > { %s1791_s19 = sshll.u32 (!%p268_p9), %s2332_s9, 1  ;;  %s2251_s22 = smov (!%p268_p9), 120  }
   0xe   : > { %271 = sbr.rel (%p268_p9) target bundleno = 4982 (0x1376), region = 52  ;;  %p303_p10 = scmp.lt.s32.totalorder (!%p268_p9), %s1791_s19, 3 }
   0xf   : > { %s2252_s23 = smov (!%p268_p9), 88   ;;  %s2781_s25 = smov (!%p268_p9), 80  }
  0x10   : > { %s2776_s26 = smov (!%p268_p9), 56   ;;  %s2777_s10 = smov (!%p268_p9), 64  }
  0x11   : > { %s2257_s12 = smov (!%p268_p9), 72   ;;  %s2780_s17 = smov (!%p268_p9), 112  }
  0x12   : > { %s2775_s18 = smov (!%p268_p9), 48   ;;  %s2772_s20 = smov (!%p268_p9), 8  }
  0x13   : > { %v1979_v0 = vld [vmem:[%s2764_s1 + $0x38] sm:$0xff]  ;;  %v1978_v1 = vld [vmem:[%s2764_s1 + $0x30] sm:$0xff]  ;;  %v1980_v2 = vld [vmem:[%s2764_s1 + $0x40] sm:$0xff]  ;;  %s2798_s19 = smov (!%p303_p10, %s1791_s19), 3  ;;  %vm396_vm0 = vcmask 130048   ;;  %vm428_vm1 = vcmask 261120  }
  0x14   : > { %400 = vmatpush.bf16.msra.mxu0 %v1979_v0  ;;  %421 = vmatpush.bf16.msra.mxu1 %v1980_v2  ;;  %s1969_s24 = sshll.u32 %s2798_s19, 3  ;;  %v1977_v3 = vld [vmem:[%s2764_s1 + $0x28] sm:$0xff]  ;;  %v1976_v7 = vld [vmem:[%s2764_s1 + $0x20] sm:$0xff]  ;;  %v1975_v8 = vld [vmem:[%s2764_s1 + $0x18] sm:$0xff]  ;;  %v2250_v27 = vmov 32.0   ;;  %vm576_vm15 = vcmask 64512  }
  0x15   : > { %s307_s13 = scalar_lea.vmem %s2763_s0, %s1969_s24  ;;  %v1974_v9 = vld [vmem:[%s2764_s1 + $0x10] sm:$0xff]  ;;  %v1973_v10 = vld [vmem:[%s2764_s1 + $0x8] sm:$0xff]  ;;  %v1972_v11 = vld [vmem:[%s2764_s1] sm:$0xff]  ;;  %2087 = vrcp.f32 %v2250_v27  ;;  %s2253_s24 = smov 96  }
  0x16   : > { %v1970_v4 = vld [vmem:[%s307_s13 + $0x4] sm:$0xf]  ;;  %v1798_v5 = vld [vmem:[%s307_s13 + $0x8] sm:$0xf0]  ;;  %v1796_v12 = vld [vmem:[%s307_s13] sm:$0xf] }
  0x17   : > { %v1801_v6 = vor.u32 %v1970_v4, %v1798_v5  ;;  %v1971_v13 = vld [vmem:[%s307_s13 + $0x4] sm:$0xf0]  ;;  %v2394_v15 = vld [vmem:[%s2770_s7] sm:$0x1f]  ;;  %s2258_s13 = smov 104   ;;  %s2774_s19 = smov 40  }
  0x18   : > { %401 = vmatpush.bf16.msra.mxu0 %v1978_v1  ;;  %v1797_v14 = vor.u32 %v1971_v13, %v1796_v12  ;;  %v332_v16 = vperm.slane %v2394_v15, 0  ;;  %v480_v58 = vperm.slane %v2394_v15, 1  ;;  %v483_v62 = vperm.slane %v2394_v15, 2  ;;  %s2778_s21 = smov 24  }
  0x19   : > { %1838 = vmatmul.msk.bf16.vlgmr.msra.gmra.mxu1 %vm396_vm0, %v1801_v6 }
  0x1b   : > { %v2088_v28 = vpop.eup %2087 }
  0x1c   : > { %402 = vmatpush.bf16.msra.mxu0 %v1977_v3  ;;  %v436_v29 = vmul.f32 32.0, %v2088_v28  ;;  %vm440_vm2 = vweird.f32 %v2088_v28 }
  0x1e   : > { %v437_v30 = vsub.f32 1.0, %v436_v29 }
  0x20   : > { %403 = vmatpush.bf16.msra.mxu0 %v1976_v7  ;;  %v438_v31 = vmul.f32 %v2088_v28, %v437_v30 }
  0x22   : > { %v439_v32 = vadd.f32 %v2088_v28, %v438_v31 }
  0x24   : > { %404 = vmatpush.bf16.msra.mxu0 %v1975_v8  ;;  %v2399_v33 = vsel %vm440_vm2, %v2088_v28, %v439_v32  ;;  %vm869_vm2 = vcmask 195584  }
  0x28   : > { %405 = vmatpush.bf16.msra.mxu0 %v1974_v9 }
  0x2c   : > { %406 = vmatpush.bf16.msra.mxu0 %v1973_v10 }
  0x30   : > { %407 = vmatpush.bf16.msra.mxu0 %v1972_v11 }
  0x33   : > { %408 = vmatmul.bf16.vlgmr.msra.gmra.mxu0 %v1797_v14 }
  0x96   : > { %v423_v17 = vpop.f32.mrf.mxu1 }
  0x9e   : > { %v425_v24 = vpop.f32.mrf.mxu1 }
  0xb0   : > { %v409_v18 = vpop.f32.mrf.mxu0 }
  0xb1   : > { %v410_v19 = vadd.f32 %v409_v18, %v332_v16 }
  0xb3   : > { %v424_v20 = vadd.f32 %v423_v17, %v410_v19 }
  0xb5   : > { %v429_v21 = vsel %vm428_vm1, %v424_v20, 0.0 }
  0xb6   : > { %430 = vadd.xlane.f32.xlu0 %v429_v21 }
  0xb8   : > { %v411_v22 = vpop.f32.mrf.mxu0 }
  0xb9   : > { %v412_v23 = vadd.f32 %v411_v22, %v332_v16  ;;  %v1981_v22 = vld [vmem:[%s2765_s2] sm:$0xff] }
  0xbb   : > { %v426_v25 = vadd.f32 %v425_v24, %v412_v23 }
  0xbd   : > { %v432_v26 = vsel %vm428_vm1, %v426_v25, 0.0 }
  0xbe   : > { %433 = vadd.xlane.f32.xlu0 %v432_v26 }
 0x129   : > { %v431_v34 = vpop.xlane.xlu0 %430 }
 0x12a   : > { %v442_v35 = vmul.f32 %v2399_v33, %v431_v34 }
 0x12c   : > { %v444_v36 = vsub.f32 %v424_v20, %v442_v35  ;;  %v1982_v20 = vld [vmem:[%s2765_s2 + $0x8] sm:$0xff] }
 0x12d   : > { %564 = vmatpush.bf16.msra.mxu2 %v1982_v20 }
 0x12e   : > { %v446_v37 = vmul.f32 %v444_v36, %v444_v36 }
 0x130   : > { %v448_v38 = vsel %vm428_vm1, %v446_v37, 0.0 }
 0x131   : > { %449 = vadd.xlane.f32.xlu1 %v448_v38  ;;  %v434_v39 = vpop.xlane.xlu0 %433  ;;  %565 = vmatpush.bf16.msra.mxu2 %v1981_v22 }
 0x132   : > { %v443_v40 = vmul.f32 %v2399_v33, %v434_v39 }
 0x134   : > { %v445_v41 = vsub.f32 %v426_v25, %v443_v40  ;;  %v2434_v40 = vld [vmem:[%s2769_s6] sm:$0xff] }
 0x136   : > { %v447_v42 = vmul.f32 %v445_v41, %v445_v41 }
 0x138   : > { %v451_v43 = vsel %vm428_vm1, %v447_v42, 0.0 }
 0x139   : > { %452 = vadd.xlane.f32.xlu1 %v451_v43  ;;  %v531_v43 = vperm.slane %v2434_v40, 0 }
 0x1a4   : > { %v450_v44 = vpop.xlane.xlu1 %449 }
 0x1a5   : > { %v454_v45 = vmul.f32 %v450_v44, %v2399_v33 }
 0x1a7   : > { %v456_v46 = vadd.f32 1e-05, %v454_v45 }
 0x1a9   : > { %2089 = vrsqrt.f32 %v456_v46  ;;  %vm464_vm4 = vweird.f32 %v456_v46 }
 0x1ac   : > { %v453_v47 = vpop.xlane.xlu1 %452 }
 0x1ad   : > { %v455_v48 = vmul.f32 %v453_v47, %v2399_v33 }
 0x1af   : > { %v2090_v49 = vpop.eup %2089  ;;  %v457_v50 = vadd.f32 1e-05, %v455_v48  ;;  %v534_v48 = vperm.slane %v2434_v40, 1 }
 0x1b0   : > { %v459_v51 = vmul.f32 %v2090_v49, %v456_v46  ;;  %vm465_vm3 = vweird.f32 %v2090_v49 }
 0x1b1   : > { %2091 = vrsqrt.f32 %v457_v50  ;;  %vm466_vm5 = vmor %vm464_vm4, %vm465_vm3  ;;  %vm474_vm7 = vweird.f32 %v457_v50 }
 0x1b2   : > { %v460_v52 = vmul.f32 %v2090_v49, %v459_v51 }
 0x1b4   : > { %v461_v53 = vmul.f32 0.5, %v460_v52 }
 0x1b6   : > { %v462_v54 = vsub.f32 1.5, %v461_v53 }
 0x1b7   : > { %v2092_v55 = vpop.eup %2091 }
 0x1b8   : > { %v463_v56 = vmul.f32 %v2090_v49, %v462_v54  ;;  %v469_v57 = vmul.f32 %v2092_v55, %v457_v50  ;;  %vm475_vm6 = vweird.f32 %v2092_v55  ;;  %v542_v54 = vperm.slane %v2434_v40, 2 }
 0x1b9   : > { %vm476_vm8 = vmor %vm474_vm7, %vm475_vm6 }
 0x1ba   : > { %v467_v59 = vsel %vm466_vm5, %v2090_v49, %v463_v56  ;;  %v470_v60 = vmul.f32 %v2092_v55, %v469_v57 }
 0x1bb   : > { %v478_v61 = vmul.f32 %v467_v59, %v444_v36 }
 0x1bc   : > { %v471_v63 = vmul.f32 0.5, %v470_v60 }
 0x1bd   : > { %v481_v0 = vmul.f32 %v480_v58, %v478_v61 }
 0x1be   : > { %v472_v1 = vsub.f32 1.5, %v471_v63 }
 0x1bf   : > { %v2409_v2 = vadd.f32 %v483_v62, %v481_v0 }
 0x1c0   : > { %v473_v3 = vmul.f32 %v2092_v55, %v472_v1 }
 0x1c1   : > { %v487_v4 = vsel %vm428_vm1, %v2409_v2, 0.0 }
 0x1c2   : > { %v477_v5 = vsel %vm476_vm8, %v2092_v55, %v473_v3  ;;  %488 = vadd.xlane.f32.xlu2 %v487_v4 }
 0x1c3   : > { %v479_v6 = vmul.f32 %v477_v5, %v445_v41 }
 0x1c5   : > { %v482_v7 = vmul.f32 %v480_v58, %v479_v6 }
 0x1c7   : > { %v2413_v8 = vadd.f32 %v483_v62, %v482_v7 }
 0x1c9   : > { %v490_v9 = vsel %vm428_vm1, %v2413_v8, 0.0 }
 0x1ca   : > { %491 = vadd.xlane.f32.xlu2 %v490_v9 }
 0x235   : > { %v489_v10 = vpop.xlane.xlu2 %488 }
 0x236   : > { %v493_v11 = vmul.f32 %v489_v10, %v2399_v33 }
 0x238   : > { %v495_v12 = vsub.f32 %v2409_v2, %v493_v11 }
 0x23a   : > { %v497_v13 = vmul.f32 %v495_v12, %v495_v12 }
 0x23c   : > { %v499_v14 = vsel %vm428_vm1, %v497_v13, 0.0 }
 0x23d   : > { %500 = vadd.xlane.f32.xlu0 %v499_v14  ;;  %v492_v15 = vpop.xlane.xlu2 %491 }
 0x23e   : > { %v494_v16 = vmul.f32 %v492_v15, %v2399_v33 }
 0x240   : > { %v496_v17 = vsub.f32 %v2413_v8, %v494_v16 }
 0x242   : > { %v498_v18 = vmul.f32 %v496_v17, %v496_v17 }
 0x244   : > { %v502_v19 = vsel %vm428_vm1, %v498_v18, 0.0 }
 0x245   : > { %503 = vadd.xlane.f32.xlu1 %v502_v19 }
 0x2b0   : > { %v501_v21 = vpop.xlane.xlu0 %500 }
 0x2b1   : > { %v505_v23 = vmul.f32 %v501_v21, %v2399_v33 }
 0x2b3   : > { %v507_v24 = vadd.f32 1e-05, %v505_v23 }
 0x2b5   : > { %2093 = vrsqrt.f32 %v507_v24  ;;  %vm515_vm10 = vweird.f32 %v507_v24 }
 0x2b8   : > { %v504_v25 = vpop.xlane.xlu1 %503 }
 0x2b9   : > { %v506_v26 = vmul.f32 %v504_v25, %v2399_v33 }
 0x2bb   : > { %v2094_v27 = vpop.eup %2093  ;;  %v508_v28 = vadd.f32 1e-05, %v506_v26 }
 0x2bc   : > { %v510_v29 = vmul.f32 %v2094_v27, %v507_v24  ;;  %vm516_vm9 = vweird.f32 %v2094_v27 }
 0x2bd   : > { %2095 = vrsqrt.f32 %v508_v28  ;;  %vm517_vm11 = vmor %vm515_vm10, %vm516_vm9  ;;  %vm525_vm13 = vweird.f32 %v508_v28  ;;  %vm1047_vm9 = vcmask 523264  }
 0x2be   : > { %v511_v30 = vmul.f32 %v2094_v27, %v510_v29 }
 0x2c0   : > { %v512_v31 = vmul.f32 0.5, %v511_v30 }
 0x2c2   : > { %v513_v32 = vsub.f32 1.5, %v512_v31 }
 0x2c3   : > { %v2096_v34 = vpop.eup %2095 }
 0x2c4   : > { %v514_v35 = vmul.f32 %v2094_v27, %v513_v32  ;;  %v520_v36 = vmul.f32 %v2096_v34, %v508_v28  ;;  %vm526_vm12 = vweird.f32 %v2096_v34 }
 0x2c5   : > { %vm527_vm14 = vmor %vm525_vm13, %vm526_vm12 }
 0x2c6   : > { %v521_v37 = vmul.f32 %v2096_v34, %v520_v36  ;;  %v518_v38 = vsel %vm517_vm11, %v2094_v27, %v514_v35 }
 0x2c7   : > { %v529_v42 = vmul.f32 %v518_v38, %v495_v12 }
 0x2c8   : > { %v522_v39 = vmul.f32 0.5, %v521_v37 }
 0x2c9   : > { %v532_v47 = vmul.f32 %v531_v43, %v529_v42 }
 0x2ca   : > { %v523_v41 = vsub.f32 1.5, %v522_v39 }
 0x2cb   : > { %v535_v50 = vadd.f32 %v534_v48, %v532_v47 }
 0x2cc   : > { %v524_v44 = vmul.f32 %v2096_v34, %v523_v41 }
 0x2ce   : > { %v528_v45 = vsel %vm527_vm14, %v2096_v34, %v524_v44 }
 0x2cf   : > { %v530_v46 = vmul.f32 %v528_v45, %v496_v17 }
 0x2d1   : > { %v533_v49 = vmul.f32 %v531_v43, %v530_v46 }
 0x2d3   : > { %v536_v51 = vadd.f32 %v534_v48, %v533_v49 }
 0x2d5   : > { %v537_v52 = vpack.c.bf16 %v536_v51, %v535_v50 }
 0x2d7   : > { %1847 = vmatmul.msk.bf16.vlgmr.msra.gmra.mxu2 %vm428_vm1, %v537_v52 }
 0x35a   : > { %v567_v53 = vpop.f32.mrf.mxu2 }
 0x35b   : > { %v568_v56 = vadd.f32 %v567_v53, %v542_v54 }
 0x362   : > { %v569_v55 = vpop.f32.mrf.mxu2 }
 0x363   : > { %v570_v57 = vadd.f32 %v569_v55, %v542_v54 }
 0x365   : > { %v2440_v58 = vpack.c.bf16 %v570_v57, %v568_v56 }
 0x367   : > { %640 = vrot.lane.b32.xlu1 %v2440_v58, %s2251_s22  ;;  %642 = vrot.lane.b32.xlu0 %v2440_v58, %s2252_s23 }
 0x368   : > { %574 = vrot.lane.b32.xlu2 %v2440_v58, %s2253_s24 }
 0x3c2   : > { %v575_v59 = vpop.permute.xlu2 %574 }
 0x3c3   : > { %v581_v60 = vsel %vm576_vm15, %v575_v59, 0 }
 0x3c4   : > { %590 = vmatpush.bf16.xpose.msra.mxu3 %v581_v60 }
 0x3cb   : > { %1848 = vmatmul.msk.bf16.vlgmr.msra.gmra.mxu3 %vm576_vm15, %v2440_v58 }
 0x3d9   : > { %v643_v61 = vpop.permute.xlu0 %642  ;;  %v641_v63 = vpop.permute.xlu1 %640 }
 0x3da   : > { %v648_v62 = vsel %vm576_vm15, %v643_v61, 0 }
 0x3db   : > { %657 = vmatpush.bf16.xpose.msrb.mxu2 %v648_v62 }
 0x3e2   : > { %1850 = vmatmul.msk.bf16.vlgmr.msrb.gmra.mxu2 %vm576_vm15, %v641_v63 }
 0x44e   : > { %v592_v0 = vpop.f32.mrf.mxu3 }
 0x44f   : > { %v597_v1 = vsel %vm396_vm0, %v592_v0, -inf }
 0x450   : > { %598 = vmax.xlane.f32.xlu2 %v597_v1 }
 0x456   : > { %v594_v3 = vpop.f32.mrf.mxu3 }
 0x457   : > { %v600_v4 = vsel %vm396_vm0, %v594_v3, -inf }
 0x458   : > { %601 = vmax.xlane.f32.xlu0 %v600_v4 }
 0x465   : > { %v659_v5 = vpop.f32.mrf.mxu2 }
 0x466   : > { %v664_v6 = vsel %vm396_vm0, %v659_v5, -inf }
 0x467   : > { %665 = vmax.xlane.f32.xlu1 %v664_v6 }
 0x46c   : > { %709 = vrot.lane.b32.xlu0 %v2440_v58, %s2781_s25  ;;  %s2791_s25 = smov 16  }
 0x46d   : > { %v661_v7 = vpop.f32.mrf.mxu2 }
 0x46e   : > { %v667_v9 = vsel %vm396_vm0, %v661_v7, -inf }
 0x46f   : > { %668 = vmax.xlane.f32.xlu2 %v667_v9 }
 0x480   : > { %687 = vrot.lane.b32.xlu1 %v2440_v58, %s2776_s26 }
 0x487   : > { %620 = vrot.lane.b32.xlu2 %v2440_v58, %s2777_s10 }
 0x4c3   : > { %v599_v10 = vpop.xlane.xlu2 %598 }
 0x4c4   : > { %v603_v11 = vsub.f32 %v592_v0, %v599_v10 }
 0x4c6   : > { %v605_v12 = vmul.f32 1.442695, %v603_v11 }
 0x4c8   : > { %2097 = vpow2.f32 %v605_v12 }
 0x4cb   : > { %v602_v13 = vpop.xlane.xlu0 %601 }
 0x4cc   : > { %v604_v14 = vsub.f32 %v594_v3, %v602_v13 }
 0x4ce   : > { %v2098_v15 = vpop.eup %2097  ;;  %v607_v16 = vmul.f32 1.442695, %v604_v14 }
 0x4cf   : > { %v609_v17 = vsel %vm396_vm0, %v2098_v15, 0.0 }
 0x4d0   : > { %2099 = vpow2.f32 %v607_v16  ;;  %610 = vadd.xlane.f32.xlu0 %v609_v17 }
 0x4d6   : > { %v2100_v18 = vpop.eup %2099 }
 0x4d7   : > { %v612_v19 = vsel %vm396_vm0, %v2100_v18, 0.0 }
 0x4d8   : > { %613 = vadd.xlane.f32.xlu2 %v612_v19 }
 0x4da   : > { %v666_v20 = vpop.xlane.xlu1 %665 }
 0x4db   : > { %v670_v21 = vsub.f32 %v659_v5, %v666_v20 }
 0x4dd   : > { %v672_v22 = vmul.f32 1.442695, %v670_v21 }
 0x4de   : > { %v710_v28 = vpop.permute.xlu0 %709 }
 0x4df   : > { %2101 = vpow2.f32 %v672_v22  ;;  %v715_v30 = vsel %vm576_vm15, %v710_v28, 0 }
 0x4e2   : > { %v669_v23 = vpop.xlane.xlu2 %668 }
 0x4e3   : > { %v671_v24 = vsub.f32 %v661_v7, %v669_v23 }
 0x4e5   : > { %v2102_v25 = vpop.eup %2101  ;;  %v674_v26 = vmul.f32 1.442695, %v671_v24 }
 0x4e6   : > { %v676_v27 = vsel %vm396_vm0, %v2102_v25, 0.0 }
 0x4e7   : > { %2103 = vpow2.f32 %v674_v26  ;;  %677 = vadd.xlane.f32.xlu1 %v676_v27 }
 0x4ea   : > { %v621_v29 = vpop.permute.xlu2 %620 }
 0x4eb   : > { %633 = vmatpush.bf16.msrb.mxu1 %v621_v29 }
 0x4ed   : > { %v2104_v31 = vpop.eup %2103 }
 0x4ee   : > { %v679_v32 = vsel %vm396_vm0, %v2104_v31, 0.0 }
 0x4ef   : > { %724 = vmatpush.bf16.xpose.msra.mxu1 %v715_v30  ;;  %680 = vadd.xlane.f32.xlu0 %v679_v32 }
 0x4f0   : > { %776 = vrot.lane.b32.xlu2 %v2440_v58, %s2257_s12 }
 0x4f2   : > { %v688_v34 = vpop.permute.xlu1 %687 }
 0x4f3   : > { %700 = vmatpush.bf16.msrb.mxu3 %v688_v34 }
 0x500   : > { %774 = vrot.lane.b32.xlu1 %v2440_v58, %s2258_s13 }
 0x503   : > { %707 = vrot.lane.b32.xlu0 %v2440_v58, %s2780_s17  ;;  %s2792_s17 = smov 24  }
 0x543   : > { %v611_v35 = vpop.xlane.xlu0 %610 }
 0x544   : > { %2105 = vrcp.f32 %v611_v35 }
 0x54a   : > { %v2106_v37 = vpop.eup %2105 }
 0x54b   : > { %v614_v36 = vpop.xlane.xlu2 %613  ;;  %v617_v39 = vmul.f32 %v2106_v37, %v2098_v15 }
 0x54c   : > { %2107 = vrcp.f32 %v614_v36 }
 0x552   : > { %v2108_v38 = vpop.eup %2107 }
 0x553   : > { %v618_v41 = vmul.f32 %v2108_v38, %v2100_v18  ;;  %v777_v42 = vpop.permute.xlu2 %776 }
 0x554   : > { %v782_v43 = vsel %vm576_vm15, %v777_v42, 0 }
 0x555   : > { %791 = vmatpush.bf16.xpose.msra.mxu3 %v782_v43  ;;  %v619_v44 = vpack.c.bf16 %v618_v41, %v617_v39 }
 0x557   : > { %1849 = vmatmul.msk.bf16.vlgmr.msrb.gmra.mxu1 %vm396_vm0, %v619_v44 }
 0x55a   : > { %v678_v45 = vpop.xlane.xlu1 %677 }
 0x55b   : > { %2109 = vrcp.f32 %v678_v45 }
 0x561   : > { %v2110_v47 = vpop.eup %2109 }
 0x562   : > { %v681_v46 = vpop.xlane.xlu0 %680  ;;  %v684_v49 = vmul.f32 %v2110_v47, %v2102_v25 }
 0x563   : > { %2111 = vrcp.f32 %v681_v46 }
 0x569   : > { %v2112_v48 = vpop.eup %2111 }
 0x56a   : > { %v685_v50 = vmul.f32 %v2112_v48, %v2104_v31 }
 0x56c   : > { %v686_v51 = vpack.c.bf16 %v685_v50, %v684_v49  ;;  %v1984_v49 = vld [vmem:[%s2766_s3 + $0x8] sm:$0xff]  ;;  %v1983_v50 = vld [vmem:[%s2766_s3] sm:$0xff] }
 0x56d   : > { %898 = vmatpush.bf16.msrb.mxu1 %v1984_v49 }
 0x56e   : > { %1851 = vmatmul.msk.bf16.vlgmr.msrb.gmra.mxu3 %vm396_vm0, %v686_v51 }
 0x571   : > { %899 = vmatpush.bf16.msrb.mxu1 %v1983_v50 }
 0x572   : > { %v775_v53 = vpop.permute.xlu1 %774 }
 0x575   : > { %v708_v52 = vpop.permute.xlu0 %707 }
 0x576   : > { %1852 = vmatmul.msk.bf16.vlgmr.msra.gmra.mxu1 %vm576_vm15, %v708_v52 }
 0x57e   : > { %1854 = vmatmul.msk.bf16.vlgmr.msra.gmra.mxu3 %vm576_vm15, %v775_v53 }
 0x5d4   : > { %v2479_v54 = vpop.f32.mrf.mxu1 }
 0x5dc   : > { %v2481_v55 = vpop.f32.mrf.mxu1 }
 0x5f1   : > { %v702_v56 = vpop.f32.mrf.mxu3 }
 0x5f3   : > { %v726_v57 = vpop.f32.mrf.mxu1 }
 0x5f4   : > { %v731_v59 = vsel %vm396_vm0, %v726_v57, -inf }
 0x5f5   : > { %732 = vmax.xlane.f32.xlu2 %v731_v59 }
 0x5f9   : > { %v704_v60 = vpop.f32.mrf.mxu3 }
 0x5fa   : > { %v2057_v61 = vpack.i.bf16 %v704_v60, %v702_v56 }
 0x5fb   : > { %v728_v62 = vpop.f32.mrf.mxu1 }
 0x5fc   : > { %v734_v63 = vsel %vm396_vm0, %v728_v62, -inf }
 0x5fd   : > { %735 = vmax.xlane.f32.xlu0 %v734_v63 }
 0x601   : > { %v793_v0 = vpop.f32.mrf.mxu3 }
 0x602   : > { %v798_v1 = vsel %vm396_vm0, %v793_v0, -inf }
 0x603   : > { %799 = vmax.xlane.f32.xlu1 %v798_v1 }
 0x609   : > { %v795_v3 = vpop.f32.mrf.mxu3 }
 0x60a   : > { %v801_v4 = vsel %vm396_vm0, %v795_v3, -inf }
 0x60b   : > { %802 = vmax.xlane.f32.xlu2 %v801_v4 }
 0x668   : > { %v733_v5 = vpop.xlane.xlu2 %732 }
 0x669   : > { %v737_v6 = vsub.f32 %v726_v57, %v733_v5 }
 0x66b   : > { %v739_v7 = vmul.f32 1.442695, %v737_v6 }
 0x66d   : > { %2113 = vpow2.f32 %v739_v7  ;;  %v908_v7 = vperm.slane %v2434_v40, 3 }
 0x670   : > { %v736_v9 = vpop.xlane.xlu0 %735 }
 0x671   : > { %v738_v10 = vsub.f32 %v728_v62, %v736_v9 }
 0x673   : > { %v2114_v11 = vpop.eup %2113  ;;  %v741_v12 = vmul.f32 1.442695, %v738_v10 }
 0x674   : > { %v743_v13 = vsel %vm396_vm0, %v2114_v11, 0.0 }
 0x675   : > { %2115 = vpow2.f32 %v741_v12  ;;  %744 = vadd.xlane.f32.xlu0 %v743_v13 }
 0x676   : > { %v800_v14 = vpop.xlane.xlu1 %799 }
 0x677   : > { %v804_v15 = vsub.f32 %v793_v0, %v800_v14 }
 0x679   : > { %v806_v16 = vmul.f32 1.442695, %v804_v15 }
 0x67b   : > { %v2116_v17 = vpop.eup %2115  ;;  %2117 = vpow2.f32 %v806_v16 }
 0x67c   : > { %v746_v18 = vsel %vm396_vm0, %v2116_v17, 0.0 }
 0x67d   : > { %747 = vadd.xlane.f32.xlu1 %v746_v18 }
 0x67e   : > { %v803_v19 = vpop.xlane.xlu2 %802 }
 0x67f   : > { %v805_v20 = vsub.f32 %v795_v3, %v803_v19 }
 0x681   : > { %v2118_v21 = vpop.eup %2117  ;;  %v808_v22 = vmul.f32 1.442695, %v805_v20 }
 0x682   : > { %v810_v23 = vsel %vm396_vm0, %v2118_v21, 0.0 }
 0x683   : > { %2119 = vpow2.f32 %v808_v22  ;;  %811 = vadd.xlane.f32.xlu2 %v810_v23  ;;  %v1986_v23 = vld [vmem:[%s2767_s4 + $0x8] sm:$0xff] }
 0x689   : > { %v2120_v24 = vpop.eup %2119 }
 0x68a   : > { %v813_v25 = vsel %vm396_vm0, %v2120_v24, 0.0 }
 0x68b   : > { %814 = vadd.xlane.f32.xlu0 %v813_v25 }
 0x696   : > { %754 = vrot.lane.b32.xlu1 %v2440_v58, %s2775_s18  ;;  %s2784_s18 = smov 80  }
 0x69b   : > { %821 = vrot.lane.b32.xlu2 %v2440_v58, %s2774_s19  ;;  %s2785_s19 = smov 112  }
 0x69f   : > { %2058 = vrot.lane.b32.xlu0 %v2057_v61, %s2772_s20  ;;  %s2779_s20 = smov 16  }
 0x6e8   : > { %v745_v26 = vpop.xlane.xlu0 %744 }
 0x6f0   : > { %v748_v28 = vpop.xlane.xlu1 %747 }
 0x6f1   : > { %2121 = vrcp.f32 %v748_v28 }
 0x6f6   : > { %v812_v27 = vpop.xlane.xlu2 %811 }
 0x6f7   : > { %2123 = vrcp.f32 %v812_v27  ;;  %v2122_v31 = vpop.eup %2121  ;;  %v1985_v27 = vld [vmem:[%s2767_s4] sm:$0xff] }
 0x6f8   : > { %2125 = vrcp.f32 %v745_v26  ;;  %v752_v36 = vmul.f32 %v2122_v31, %v2116_v17 }
 0x6fd   : > { %v2124_v32 = vpop.eup %2123 }
 0x6fe   : > { %v822_v29 = vpop.permute.xlu2 %821  ;;  %v815_v30 = vpop.xlane.xlu0 %814  ;;  %v818_v37 = vmul.f32 %v2124_v32, %v2118_v21 }
 0x6ff   : > { %2127 = vrcp.f32 %v815_v30  ;;  %834 = vmatpush.bf16.msrb.mxu0 %v822_v29  ;;  %v2126_v34 = vpop.eup %2125 }
 0x700   : > { %v751_v38 = vmul.f32 %v2126_v34, %v2114_v11 }
 0x702   : > { %v753_v42 = vpack.c.bf16 %v752_v36, %v751_v38 }
 0x705   : > { %v2128_v35 = vpop.eup %2127 }
 0x706   : > { %v819_v58 = vmul.f32 %v2128_v35, %v2120_v24 }
 0x708   : > { %v755_v39 = vpop.permute.xlu1 %754  ;;  %v820_v41 = vpack.c.bf16 %v819_v58, %v818_v37 }
 0x709   : > { %767 = vmatpush.bf16.msra.mxu2 %v755_v39 }
 0x70a   : > { %1855 = vmatmul.msk.bf16.vlgmr.msrb.gmra.mxu0 %vm396_vm0, %v820_v41 }
 0x70c   : > { %1853 = vmatmul.msk.bf16.vlgmr.msra.gmra.mxu2 %vm396_vm0, %v753_v42 }
 0x70d   : > { %988 = vmatpush.bf16.msrb.mxu2 %v1986_v23 }
 0x711   : > { %v2059_v51 = vpop.permute.xlu0 %2058  ;;  %989 = vmatpush.bf16.msrb.mxu2 %v1985_v27 }
 0x712   : > { %v2061_v52 = vunpack.i.h.bf16 %v2059_v51  ;;  %v2060_v53 = vunpack.i.l.bf16 %v2059_v51 }
 0x714   : > { %v866_v61 = vsel %vm576_vm15, %v2481_v55, %v2061_v52  ;;  %v865_v62 = vsel %vm576_vm15, %v2479_v54, %v2060_v53 }
 0x787   : > { %v836_v43 = vpop.f32.mrf.mxu0 }
 0x78f   : > { %v769_v44 = vpop.f32.mrf.mxu2  ;;  %v838_v45 = vpop.f32.mrf.mxu0 }
 0x790   : > { %v2067_v46 = vpack.i.bf16 %v838_v45, %v836_v43 }
 0x792   : > { %2068 = vrot.lane.b32.xlu0 %v2067_v46, %s2778_s21 }
 0x797   : > { %v771_v47 = vpop.f32.mrf.mxu2 }
 0x798   : > { %v2062_v48 = vpack.i.bf16 %v771_v47, %v769_v44  ;;  %v955_v44 = vperm.slane %v2434_v40, 4 }
 0x79a   : > { %2063 = vrot.lane.b32.xlu1 %v2062_v48, %s2779_s20  ;;  %v958_v48 = vperm.slane %v2434_v40, 5 }
 0x804   : > { %v2069_v56 = vpop.permute.xlu0 %2068 }
 0x805   : > { %v2071_v63 = vunpack.i.h.bf16 %v2069_v56  ;;  %v2070_v0 = vunpack.i.l.bf16 %v2069_v56 }
 0x80c   : > { %v2064_v57 = vpop.permute.xlu1 %2063 }
 0x80d   : > { %v2066_v59 = vunpack.i.h.bf16 %v2064_v57  ;;  %v2065_v60 = vunpack.i.l.bf16 %v2064_v57  ;;  %v1990_v57 = vld [vmem:[%s2768_s5 + $0x18] sm:$0xff] }
 0x80e   : > { %1055 = vmatpush.bf16.msrb.mxu3 %v1990_v57 }
 0x80f   : > { %v867_v1 = vsel %vm396_vm0, %v865_v62, %v2065_v60  ;;  %v868_v3 = vsel %vm396_vm0, %v866_v61, %v2066_v59  ;;  %v1989_v59 = vld [vmem:[%s2768_s5 + $0x10] sm:$0xff]  ;;  %v1988_v60 = vld [vmem:[%s2768_s5 + $0x8] sm:$0xff]  ;;  %v966_v61 = vperm.slane %v2434_v40, 6 }
 0x810   : > { %v870_v4 = vsel %vm869_vm2, %v867_v1, %v2070_v0  ;;  %v871_v5 = vsel %vm869_vm2, %v868_v3, %v2071_v63  ;;  %v1987_v63 = vld [vmem:[%s2768_s5] sm:$0xff] }
 0x811   : > { %v872_v6 = vpack.c.bf16 %v871_v5, %v870_v4 }
 0x812   : > { %1056 = vmatpush.bf16.msrb.mxu3 %v1989_v59  ;;  %v2585_v59 = vld [vmem:[%s2769_s6 + $0x8] sm:$0xff] }
 0x813   : > { %1864 = vmatmul.msk.bf16.vlgmr.msrb.gmra.mxu1 %vm428_vm1, %v872_v6 }
 0x816   : > { %1057 = vmatpush.bf16.msrb.mxu3 %v1988_v60 }
 0x81a   : > { %1058 = vmatpush.bf16.msrb.mxu3 %v1987_v63  ;;  %v1116_v63 = vperm.slane %v2585_v59, 0 }
 0x890   : > { %v901_v9 = vpop.f32.mrf.mxu1 }
 0x891   : > { %v906_v55 = vadd.f32 %v901_v9, %v2409_v2 }
 0x893   : > { %v2517_v10 = vadd.f32 %v908_v7, %v906_v55 }
 0x895   : > { %v911_v54 = vsel %vm428_vm1, %v2517_v10, 0.0 }
 0x896   : > { %912 = vadd.xlane.f32.xlu2 %v911_v54 }
 0x898   : > { %v903_v11 = vpop.f32.mrf.mxu1 }
 0x899   : > { %v907_v12 = vadd.f32 %v903_v11, %v2413_v8 }
 0x89b   : > { %v2522_v13 = vadd.f32 %v908_v7, %v907_v12 }
 0x89d   : > { %v914_v14 = vsel %vm428_vm1, %v2522_v13, 0.0 }
 0x89e   : > { %915 = vadd.xlane.f32.xlu1 %v914_v14 }
 0x909   : > { %v913_v15 = vpop.xlane.xlu2 %912 }
 0x90a   : > { %v917_v16 = vmul.f32 %v913_v15, %v2399_v33 }
 0x90c   : > { %v919_v2 = vsub.f32 %v2517_v10, %v917_v16 }
 0x90e   : > { %v921_v17 = vmul.f32 %v919_v2, %v919_v2 }
 0x910   : > { %v923_v18 = vsel %vm428_vm1, %v921_v17, 0.0 }
 0x911   : > { %924 = vadd.xlane.f32.xlu0 %v923_v18  ;;  %v916_v19 = vpop.xlane.xlu1 %915 }
 0x912   : > { %v918_v20 = vmul.f32 %v916_v19, %v2399_v33 }
 0x914   : > { %v920_v8 = vsub.f32 %v2522_v13, %v918_v20 }
 0x916   : > { %v922_v21 = vmul.f32 %v920_v8, %v920_v8 }
 0x918   : > { %v926_v22 = vsel %vm428_vm1, %v922_v21, 0.0 }
 0x919   : > { %927 = vadd.xlane.f32.xlu2 %v926_v22  ;;  %v1067_v22 = vperm.slane %v2434_v40, 7 }
 0x984   : > { %v925_v24 = vpop.xlane.xlu0 %924 }
 0x985   : > { %v929_v25 = vmul.f32 %v925_v24, %v2399_v33 }
 0x987   : > { %v931_v26 = vadd.f32 1e-05, %v929_v25 }
 0x989   : > { %2129 = vrsqrt.f32 %v931_v26  ;;  %vm939_vm4 = vweird.f32 %v931_v26 }
 0x98c   : > { %v928_v28 = vpop.xlane.xlu2 %927 }
 0x98d   : > { %v930_v29 = vmul.f32 %v928_v28, %v2399_v33 }
 0x98f   : > { %v2130_v30 = vpop.eup %2129  ;;  %v932_v31 = vadd.f32 1e-05, %v930_v29 }
 0x990   : > { %v934_v32 = vmul.f32 %v2130_v30, %v931_v26  ;;  %vm940_vm3 = vweird.f32 %v2130_v30 }
 0x991   : > { %2131 = vrsqrt.f32 %v932_v31  ;;  %vm941_vm5 = vmor %vm939_vm4, %vm940_vm3  ;;  %vm949_vm7 = vweird.f32 %v932_v31 }
 0x992   : > { %v935_v34 = vmul.f32 %v2130_v30, %v934_v32 }
 0x994   : > { %v936_v35 = vmul.f32 0.5, %v935_v34 }
 0x996   : > { %v937_v36 = vsub.f32 1.5, %v936_v35 }
 0x997   : > { %v2132_v37 = vpop.eup %2131 }
 0x998   : > { %v938_v58 = vmul.f32 %v2130_v30, %v937_v36  ;;  %v944_v38 = vmul.f32 %v2132_v37, %v932_v31  ;;  %vm950_vm6 = vweird.f32 %v2132_v37 }
 0x999   : > { %vm951_vm8 = vmor %vm949_vm7, %vm950_vm6 }
 0x99a   : > { %v945_v39 = vmul.f32 %v2132_v37, %v944_v38  ;;  %v942_v41 = vsel %vm941_vm5, %v2130_v30, %v938_v58  ;;  %v1992_v38 = vld [vmem:[%s2765_s2 + $0x18] sm:$0xff] }
 0x99b   : > { %v953_v45 = vmul.f32 %v942_v41, %v919_v2  ;;  %1150 = vmatpush.bf16.msra.mxu0 %v1992_v38 }
 0x99c   : > { %v946_v42 = vmul.f32 0.5, %v945_v39 }
 0x99d   : > { %v956_v49 = vmul.f32 %v955_v44, %v953_v45 }
 0x99e   : > { %v947_v43 = vsub.f32 1.5, %v946_v42 }
 0x99f   : > { %v959_v52 = vadd.f32 %v958_v48, %v956_v49 }
 0x9a0   : > { %v948_v46 = vmul.f32 %v2132_v37, %v947_v43  ;;  %v1991_v43 = vld [vmem:[%s2765_s2 + $0x10] sm:$0xff] }
 0x9a1   : > { %1151 = vmatpush.bf16.msra.mxu0 %v1991_v43 }
 0x9a2   : > { %v952_v47 = vsel %vm951_vm8, %v2132_v37, %v948_v46 }
 0x9a3   : > { %v954_v50 = vmul.f32 %v952_v47, %v920_v8 }
 0x9a5   : > { %v957_v51 = vmul.f32 %v955_v44, %v954_v50 }
 0x9a7   : > { %v960_v53 = vadd.f32 %v958_v48, %v957_v51 }
 0x9a9   : > { %v961_v56 = vpack.c.bf16 %v960_v53, %v959_v52 }
 0x9ab   : > { %1873 = vmatmul.msk.bf16.vlgmr.msrb.gmra.mxu2 %vm428_vm1, %v961_v56 }
 0xa2e   : > { %v991_v62 = vpop.f32.mrf.mxu2 }
 0xa2f   : > { %v992_v0 = vadd.f32 %v991_v62, %v966_v61 }
 0xa31   : > { %v996_v1 = vmul.f32 %v992_v0, %v992_v0 }
 0xa33   : > { %v998_v3 = vmul.f32 %v996_v1, %v992_v0 }
 0xa35   : > { %v1000_v4 = vmul.f32 0.044715, %v998_v3 }
 0xa36   : > { %v993_v5 = vpop.f32.mrf.mxu2 }
 0xa37   : > { %v1002_v6 = vadd.f32 %v1000_v4, %v992_v0  ;;  %v994_v7 = vadd.f32 %v993_v5, %v966_v61  ;;  %v1119_v4 = vperm.slane %v2585_v59, 1 }
 0xa39   : > { %v1004_v9 = vmul.f32 0.7978846, %v1002_v6  ;;  %v997_v55 = vmul.f32 %v994_v7, %v994_v7 }
 0xa3b   : > { %v999_v54 = vmul.f32 %v997_v55, %v994_v7  ;;  %2133 = vtanh.f32 %v1004_v9 }
 0xa3d   : > { %v1001_v11 = vmul.f32 0.044715, %v999_v54 }
 0xa3f   : > { %v1003_v12 = vadd.f32 %v1001_v11, %v994_v7 }
 0xa41   : > { %v1005_v14 = vmul.f32 0.7978846, %v1003_v12  ;;  %v2134_v15 = vpop.eup %2133  ;;  %v1128_v12 = vperm.slane %v2585_v59, 2 }
 0xa42   : > { %v1008_v16 = vadd.f32 1.0, %v2134_v15 }
 0xa43   : > { %2135 = vtanh.f32 %v1005_v14 }
 0xa44   : > { %v1010_v17 = vmul.f32 0.5, %v1008_v16 }
 0xa46   : > { %v1012_v20 = vmul.f32 %v1010_v17, %v992_v0 }
 0xa49   : > { %v2136_v2 = vpop.eup %2135 }
 0xa4a   : > { %v1009_v18 = vadd.f32 1.0, %v2136_v2 }
 0xa4c   : > { %v1011_v19 = vmul.f32 0.5, %v1009_v18 }
 0xa4e   : > { %v1013_v8 = vmul.f32 %v1011_v19, %v994_v7 }
 0xa50   : > { %v1014_v21 = vpack.c.bf16 %v1013_v8, %v1012_v20 }
 0xa52   : > { %1890 = vmatmul.msk.bf16.vlgmr.msrb.gmra.mxu3 %vm1047_vm9, %v1014_v21 }
 0xad5   : > { %v1060_v23 = vpop.f32.mrf.mxu3 }
 0xad6   : > { %v1065_v24 = vadd.f32 %v1060_v23, %v2517_v10 }
 0xad8   : > { %v2559_v25 = vadd.f32 %v1067_v22, %v1065_v24 }
 0xada   : > { %v1072_v26 = vsel %vm428_vm1, %v2559_v25, 0.0 }
 0xadb   : > { %1073 = vadd.xlane.f32.xlu1 %v1072_v26 }
 0xadd   : > { %v1062_v27 = vpop.f32.mrf.mxu3 }
 0xade   : > { %v1066_v28 = vadd.f32 %v1062_v27, %v2522_v13 }
 0xae0   : > { %v2564_v29 = vadd.f32 %v1067_v22, %v1066_v28 }
 0xae2   : > { %v1075_v30 = vsel %vm428_vm1, %v2564_v29, 0.0 }
 0xae3   : > { %1076 = vadd.xlane.f32.xlu0 %v1075_v30 }
 0xb4e   : > { %v1074_v31 = vpop.xlane.xlu1 %1073 }
 0xb4f   : > { %v1078_v40 = vmul.f32 %v1074_v31, %v2399_v33 }
 0xb51   : > { %v1080_v10 = vsub.f32 %v2559_v25, %v1078_v40 }
 0xb53   : > { %v1082_v32 = vmul.f32 %v1080_v10, %v1080_v10 }
 0xb55   : > { %v1084_v34 = vsel %vm428_vm1, %v1082_v32, 0.0 }
 0xb56   : > { %1085 = vadd.xlane.f32.xlu2 %v1084_v34  ;;  %v1077_v35 = vpop.xlane.xlu0 %1076 }
 0xb57   : > { %v1079_v36 = vmul.f32 %v1077_v35, %v2399_v33 }
 0xb59   : > { %v1081_v13 = vsub.f32 %v2564_v29, %v1079_v36 }
 0xb5b   : > { %v1083_v37 = vmul.f32 %v1081_v13, %v1081_v13 }
 0xb5d   : > { %v1087_v58 = vsel %vm428_vm1, %v1083_v37, 0.0 }
 0xb5e   : > { %1088 = vadd.xlane.f32.xlu1 %v1087_v58 }
 0xbc9   : > { %v1086_v39 = vpop.xlane.xlu2 %1085 }
 0xbca   : > { %v1090_v41 = vmul.f32 %v1086_v39, %v2399_v33 }
 0xbcc   : > { %v1092_v42 = vadd.f32 1e-05, %v1090_v41 }
 0xbce   : > { %2137 = vrsqrt.f32 %v1092_v42  ;;  %vm1100_vm11 = vweird.f32 %v1092_v42 }
 0xbd1   : > { %v1089_v44 = vpop.xlane.xlu1 %1088 }
 0xbd2   : > { %v1091_v45 = vmul.f32 %v1089_v44, %v2399_v33 }
 0xbd4   : > { %v2138_v46 = vpop.eup %2137  ;;  %v1093_v47 = vadd.f32 1e-05, %v1091_v45 }
 0xbd5   : > { %v1095_v48 = vmul.f32 %v2138_v46, %v1092_v42  ;;  %vm1101_vm10 = vweird.f32 %v2138_v46 }
 0xbd6   : > { %2139 = vrsqrt.f32 %v1093_v47  ;;  %vm1102_vm12 = vmor %vm1100_vm11, %vm1101_vm10  ;;  %vm1110_vm14 = vweird.f32 %v1093_v47 }
 0xbd7   : > { %v1096_v49 = vmul.f32 %v2138_v46, %v1095_v48 }
 0xbd9   : > { %v1097_v50 = vmul.f32 0.5, %v1096_v49 }
 0xbdb   : > { %v1098_v51 = vsub.f32 1.5, %v1097_v50 }
 0xbdc   : > { %v2140_v52 = vpop.eup %2139 }
 0xbdd   : > { %v1099_v53 = vmul.f32 %v2138_v46, %v1098_v51  ;;  %v1105_v56 = vmul.f32 %v2140_v52, %v1093_v47  ;;  %vm1111_vm13 = vweird.f32 %v2140_v52 }
 0xbde   : > { %vm1112_vm3 = vmor %vm1110_vm14, %vm1111_vm13 }
 0xbdf   : > { %v1106_v57 = vmul.f32 %v2140_v52, %v1105_v56  ;;  %v1103_v60 = vsel %vm1102_vm12, %v2138_v46, %v1099_v53 }
 0xbe0   : > { %v1114_v0 = vmul.f32 %v1103_v60, %v1080_v10 }
 0xbe1   : > { %v1107_v61 = vmul.f32 0.5, %v1106_v57 }
 0xbe2   : > { %v1117_v5 = vmul.f32 %v1116_v63, %v1114_v0 }
 0xbe3   : > { %v1108_v62 = vsub.f32 1.5, %v1107_v61 }
 0xbe4   : > { %v1120_v9 = vadd.f32 %v1119_v4, %v1117_v5 }
 0xbe5   : > { %v1109_v1 = vmul.f32 %v2140_v52, %v1108_v62 }
 0xbe7   : > { %v1113_v3 = vsel %vm1112_vm3, %v2140_v52, %v1109_v1 }
 0xbe8   : > { %v1115_v6 = vmul.f32 %v1113_v3, %v1081_v13 }
 0xbea   : > { %v1118_v7 = vmul.f32 %v1116_v63, %v1115_v6 }
 0xbec   : > { %v1121_v55 = vadd.f32 %v1119_v4, %v1118_v7 }
 0xbee   : > { %v1122_v54 = vpack.c.bf16 %v1121_v55, %v1120_v9 }
 0xbf0   : > { %1904 = vmatmul.msk.bf16.vlgmr.msra.gmra.mxu0 %vm428_vm1, %v1122_v54 }
 0xc6d   : > { %v1153_v11 = vpop.f32.mrf.mxu0 }
 0xc6e   : > { %v1154_v15 = vadd.f32 %v1153_v11, %v1128_v12 }
 0xc75   : > { %v1155_v14 = vpop.f32.mrf.mxu0 }
 0xc76   : > { %v1156_v16 = vadd.f32 %v1155_v14, %v1128_v12 }
 0xc78   : > { %v2591_v2 = vpack.c.bf16 %v1156_v16, %v1154_v15 }
 0xc7a   : > { %1225 = vrot.lane.b32.xlu1 %v2591_v2, %s2251_s22  ;;  %1227 = vrot.lane.b32.xlu2 %v2591_v2, %s2252_s23  ;;  %s2786_s22 = smov 64   ;;  %s2787_s23 = smov 56  }
 0xc7b   : > { %1160 = vrot.lane.b32.xlu0 %v2591_v2, %s2253_s24  ;;  %s2788_s24 = smov 48  }
 0xc82   : > { %1359 = vrot.lane.b32.xlu1 %v2591_v2, %s2258_s13  ;;  %1361 = vrot.lane.b32.xlu2 %v2591_v2, %s2257_s12  ;;  %s2789_s12 = smov 40   ;;  %s2790_s13 = smov 8  }
 0xc83   : > { %1294 = vrot.lane.b32.xlu0 %v2591_v2, %s2784_s18  ;;  %s299_s18 = sand.u32 1, %s2240_s28  }
 0xc8b   : > { %1292 = vrot.lane.b32.xlu0 %v2591_v2, %s2785_s19 }
 0xcd4   : > { %v1228_v17 = vpop.permute.xlu2 %1227 }
 0xcd5   : > { %v1233_v18 = vsel %vm576_vm15, %v1228_v17, 0 }
 0xcd6   : > { %1242 = vmatpush.bf16.xpose.msra.mxu3 %v1233_v18 }
 0xcdc   : > { %v1362_v19 = vpop.permute.xlu2 %1361 }
 0xcdd   : > { %v1367_v20 = vsel %vm576_vm15, %v1362_v19, 0 }
 0xcde   : > { %1376 = vmatpush.bf16.xpose.msrb.mxu3 %v1367_v20 }
 0xcec   : > { %v1226_v8 = vpop.permute.xlu1 %1225 }
 0xced   : > { %v1161_v21 = vpop.permute.xlu0 %1160  ;;  %1907 = vmatmul.msk.bf16.vlgmr.msra.gmra.mxu3 %vm576_vm15, %v1226_v8 }
 0xcee   : > { %v1166_v22 = vsel %vm576_vm15, %v1161_v21, 0 }
 0xcef   : > { %1175 = vmatpush.bf16.xpose.msra.mxu1 %v1166_v22 }
 0xcf4   : > { %v1360_v26 = vpop.permute.xlu1 %1359 }
 0xcf5   : > { %v1295_v23 = vpop.permute.xlu0 %1294 }
 0xcf6   : > { %v1300_v24 = vsel %vm576_vm15, %v1295_v23, 0  ;;  %1905 = vmatmul.msk.bf16.vlgmr.msra.gmra.mxu1 %vm576_vm15, %v2591_v2 }
 0xcf7   : > { %1309 = vmatpush.bf16.xpose.msrb.mxu1 %v1300_v24 }
 0xcfd   : > { %1911 = vmatmul.msk.bf16.vlgmr.msrb.gmra.mxu3 %vm576_vm15, %v1360_v26  ;;  %v1293_v27 = vpop.permute.xlu0 %1292 }
 0xd06   : > { %1909 = vmatmul.msk.bf16.vlgmr.msrb.gmra.mxu1 %vm576_vm15, %v1293_v27 }
 0xd70   : > { %v1244_v28 = vpop.f32.mrf.mxu3 }
 0xd71   : > { %v1249_v30 = vsel %vm396_vm0, %v1244_v28, -inf }
 0xd72   : > { %1250 = vmax.xlane.f32.xlu1 %v1249_v30 }
 0xd73   : > { %v1177_v31 = vpop.f32.mrf.mxu1 }
 0xd74   : > { %v1182_v40 = vsel %vm396_vm0, %v1177_v31, -inf }
 0xd75   : > { %1183 = vmax.xlane.f32.xlu2 %v1182_v40 }
 0xd78   : > { %v1246_v10 = vpop.f32.mrf.mxu3 }
 0xd79   : > { %v1252_v34 = vsel %vm396_vm0, %v1246_v10, -inf }
 0xd7b   : > { %v1179_v32 = vpop.f32.mrf.mxu1 }
 0xd7c   : > { %v1185_v35 = vsel %vm396_vm0, %v1179_v32, -inf }
 0xd7d   : > { %1253 = vmax.xlane.f32.xlu2 %v1252_v34  ;;  %1186 = vmax.xlane.f32.xlu0 %v1185_v35 }
 0xd80   : > { %v2620_v36 = vpop.f32.mrf.mxu3 }
 0xd81   : > { %v1383_v37 = vsel %vm396_vm0, %v2620_v36, -inf }
 0xd83   : > { %v1311_v13 = vpop.f32.mrf.mxu1 }
 0xd84   : > { %v1316_v58 = vsel %vm396_vm0, %v1311_v13, -inf }
 0xd85   : > { %1384 = vmax.xlane.f32.xlu2 %v1383_v37  ;;  %1317 = vmax.xlane.f32.xlu0 %v1316_v58 }
 0xd88   : > { %v1380_v38 = vpop.f32.mrf.mxu3 }
 0xd89   : > { %v1386_v41 = vsel %vm396_vm0, %v1380_v38, -inf }
 0xd8b   : > { %v1313_v39 = vpop.f32.mrf.mxu1 }
 0xd8c   : > { %v1319_v42 = vsel %vm396_vm0, %v1313_v39, -inf }
 0xd8d   : > { %1387 = vmax.xlane.f32.xlu0 %v1386_v41  ;;  %1320 = vmax.xlane.f32.xlu1 %v1319_v42 }
 0xd9d   : > { %1205 = vrot.lane.b32.xlu2 %v2591_v2, %s2786_s22 }
 0xde5   : > { %v1251_v43 = vpop.xlane.xlu1 %1250 }
 0xde6   : > { %v1255_v44 = vsub.f32 %v1244_v28, %v1251_v43 }
 0xde8   : > { %v1257_v45 = vmul.f32 1.442695, %v1255_v44  ;;  %v1184_v46 = vpop.xlane.xlu2 %1183 }
 0xde9   : > { %v1188_v47 = vsub.f32 %v1177_v31, %v1184_v46 }
 0xdea   : > { %2141 = vpow2.f32 %v1257_v45 }
 0xdeb   : > { %v1190_v48 = vmul.f32 1.442695, %v1188_v47 }
 0xded   : > { %2143 = vpow2.f32 %v1190_v48 }
 0xdf0   : > { %v2629_v49 = vpop.eup %2141  ;;  %v1254_v50 = vpop.xlane.xlu2 %1253 }
 0xdf1   : > { %v1187_v51 = vpop.xlane.xlu0 %1186  ;;  %v1256_v52 = vsub.f32 %v1246_v10, %v1254_v50  ;;  %v1261_v56 = vsel %vm396_vm0, %v2629_v49, 0.0 }
 0xdf2   : > { %v1189_v53 = vsub.f32 %v1179_v32, %v1187_v51  ;;  %1262 = vadd.xlane.f32.xlu0 %v1261_v56 }
 0xdf3   : > { %v2144_v57 = vpop.eup %2143  ;;  %v1259_v60 = vmul.f32 1.442695, %v1256_v52 }
 0xdf4   : > { %v1192_v61 = vmul.f32 1.442695, %v1189_v53  ;;  %v1194_v62 = vsel %vm396_vm0, %v2144_v57, 0.0 }
 0xdf5   : > { %2145 = vpow2.f32 %v1259_v60  ;;  %1195 = vadd.xlane.f32.xlu1 %v1194_v62 }
 0xdf6   : > { %2147 = vpow2.f32 %v1192_v61 }
 0xdf8   : > { %v1385_v63 = vpop.xlane.xlu2 %1384 }
 0xdf9   : > { %v1318_v0 = vpop.xlane.xlu0 %1317  ;;  %v1389_v21 = vsub.f32 %v2620_v36, %v1385_v63 }
 0xdfa   : > { %v1322_v1 = vsub.f32 %v1311_v13, %v1318_v0 }
 0xdfb   : > { %v2146_v3 = vpop.eup %2145  ;;  %v1391_v22 = vmul.f32 1.442695, %v1389_v21 }
 0xdfc   : > { %v1324_v4 = vmul.f32 1.442695, %v1322_v1  ;;  %v2148_v5 = vpop.eup %2147  ;;  %v1264_v6 = vsel %vm396_vm0, %v2146_v3, 0.0 }
 0xdfd   : > { %1265 = vadd.xlane.f32.xlu1 %v1264_v6  ;;  %v1197_v7 = vsel %vm396_vm0, %v2148_v5, 0.0 }
 0xdfe   : > { %2149 = vpow2.f32 %v1324_v4  ;;  %1198 = vadd.xlane.f32.xlu2 %v1197_v7  ;;  %v1994_v7 = vld [vmem:[%s2766_s3 + $0x18] sm:$0xff] }
 0xdff   : > { %1483 = vmatpush.bf16.msra.mxu1 %v1994_v7 }
 0xe00   : > { %v1206_v9 = vpop.permute.xlu2 %1205  ;;  %v1321_v55 = vpop.xlane.xlu1 %1320 }
 0xe01   : > { %v1323_v54 = vsub.f32 %v1313_v39, %v1321_v55  ;;  %v1388_v11 = vpop.xlane.xlu0 %1387  ;;  %1218 = vmatpush.bf16.msra.mxu2 %v1206_v9  ;;  %v1993_v9 = vld [vmem:[%s2766_s3 + $0x10] sm:$0xff] }
 0xe02   : > { %v1390_v15 = vsub.f32 %v1380_v38, %v1388_v11 }
 0xe03   : > { %v1326_v12 = vmul.f32 1.442695, %v1323_v54  ;;  %1484 = vmatpush.bf16.msra.mxu1 %v1993_v9 }
 0xe04   : > { %v2150_v14 = vpop.eup %2149  ;;  %v1393_v17 = vmul.f32 1.442695, %v1390_v15 }
 0xe05   : > { %2151 = vpow2.f32 %v1326_v12  ;;  %v1328_v16 = vsel %vm396_vm0, %v2150_v14, 0.0 }
 0xe06   : > { %1329 = vadd.xlane.f32.xlu1 %v1328_v16  ;;  %1272 = vrot.lane.b32.xlu0 %v2591_v2, %s2787_s23  ;;  %2153 = vpow2.f32 %v1393_v17  ;;  %s1790_s23 = sshll.u32 %s299_s18, 4 }
 0xe07   : > { %2155 = vpow2.f32 %v1391_v22 }
 0xe0b   : > { %v2152_v18 = vpop.eup %2151 }
 0xe0c   : > { %v1331_v19 = vsel %vm396_vm0, %v2152_v18, 0.0  ;;  %v2154_v20 = vpop.eup %2153 }
 0xe0d   : > { %v1398_v8 = vsel %vm396_vm0, %v2154_v20, 0.0  ;;  %v2156_v23 = vpop.eup %2155 }
 0xe0e   : > { %1332 = vadd.xlane.f32.xlu1 %v1331_v19  ;;  %v1395_v24 = vsel %vm396_vm0, %v2156_v23, 0.0 }
 0xe16   : > { %1339 = vrot.lane.b32.xlu2 %v2591_v2, %s2788_s24  ;;  %1399 = vadd.xlane.f32.xlu1 %v1398_v8  ;;  %s2001_s24 = sshll.u32 %s2332_s9, 4  ;;  %s1709_s9 = scalar_lea.sflag [#allocation3], %s299_s18 }
 0xe17   : > { %s1720_s20 = scalar_lea.hbm %s2771_s8, %s2001_s24  ;;  %s2206_s24 = scalar_lea.hbm %s2771_s8, 32 }
 0xe18   : > { %s1723_s26 = sshll.u32 %s1720_s20, 4  ;;  %s1724_s26 = int_to_ptr.hbm [resolvable:$true] %s1723_s26 }
 0xe19   : > { %s2200_s10 = sshra.s32 %s1724_s26, 4  ;;  %s2201_s10 = int_to_ptr.hbm [resolvable:$true] %s2200_s10 }
 0xe1a   : > { %s2202_s19 = scalar_lea.hbm %s2201_s10, 16  ;;  %p2207_p0 = scmp.lt.s32.totalorder %s2201_s10, %s2771_s8 }
 0xe1b   : > { %p2203_p11 = scmp.ne.s32.totalorder %s2201_s10, %s2202_s19  ;;  %p2208_p1 = scmp.lt.s32.totalorder %s2206_s24, %s2202_s19 }
 0xe1d   : > { %p2204_p12 = pnand %p2203_p11, %p2349_p5  ;;  %p2209_p2 = por %p2208_p1, %p2207_p0 }
 0xe1f   : > { %p2205_p13 = pneg %p2204_p12 }
 0xe21   : > { %p2210_p3 = pnand %p2209_p2, %p2205_p13 }
 0xe2f   : > { %1406 = vrot.lane.b32.xlu1 %v2591_v2, %s2789_s12  ;;  %s301_s12 = scalar_lea.vmem [#allocation2], %s1790_s23 }
 0xe30   : > { %1396 = vadd.xlane.f32.xlu0 %v1395_v24  ;;  %s1721_s21 = sshll.u32 %s301_s12, 4  ;;  %s1722_s21 = int_to_ptr.vmem [resolvable:$true] %s1721_s21 }
 0xe65   : > { %v1263_v27 = vpop.xlane.xlu0 %1262 }
 0xe66   : > { %2157 = vrcp.f32 %v1263_v27 }
 0xe68   : > { %v1196_v26 = vpop.xlane.xlu1 %1195 }
 0xe69   : > { %2159 = vrcp.f32 %v1196_v26  ;;  %v1493_v26 = vperm.slane %v2585_v59, 3 }
 0xe6c   : > { %v2158_v31 = vpop.eup %2157 }
 0xe6d   : > { %v1269_v34 = vmul.f32 %v2158_v31, %v2629_v49 }
 0xe6f   : > { %v2160_v40 = vpop.eup %2159 }
 0xe70   : > { %v1266_v28 = vpop.xlane.xlu1 %1265  ;;  %v1202_v2 = vmul.f32 %v2160_v40, %v2144_v57 }
 0xe71   : > { %2161 = vrcp.f32 %v1266_v28  ;;  %v1199_v30 = vpop.xlane.xlu2 %1198 }
 0xe72   : > { %2163 = vrcp.f32 %v1199_v30 }
 0xe77   : > { %v2162_v10 = vpop.eup %2161 }
 0xe78   : > { %v2164_v32 = vpop.eup %2163  ;;  %v1270_v35 = vmul.f32 %v2162_v10, %v2146_v3  ;;  %v1273_v36 = vpop.permute.xlu0 %1272 }
 0xe79   : > { %v1203_v13 = vmul.f32 %v2164_v32, %v2148_v5  ;;  %v1340_v37 = vpop.permute.xlu2 %1339  ;;  %v1330_v58 = vpop.xlane.xlu1 %1329  ;;  %1285 = vmatpush.bf16.msrb.mxu0 %v1273_v36 }
 0xe7a   : > { %v1271_v38 = vpack.c.bf16 %v1270_v35, %v1269_v34  ;;  %1352 = vmatpush.bf16.msrb.mxu2 %v1340_v37  ;;  %2165 = vrcp.f32 %v1330_v58 }
 0xe7b   : > { %v1204_v39 = vpack.c.bf16 %v1203_v13, %v1202_v2 }
 0xe7c   : > { %1908 = vmatmul.msk.bf16.vlgmr.msrb.gmra.mxu0 %vm396_vm0, %v1271_v38 }
 0xe7d   : > { %1906 = vmatmul.msk.bf16.vlgmr.msra.gmra.mxu2 %vm396_vm0, %v1204_v39 }
 0xe80   : > { %v2166_v42 = vpop.eup %2165 }
 0xe81   : > { %v1333_v41 = vpop.xlane.xlu1 %1332  ;;  %v1336_v44 = vmul.f32 %v2166_v42, %v2150_v14  ;;  %v1996_v42 = vld [vmem:[%s2767_s4 + $0x18] sm:$0xff] }
 0xe82   : > { %2167 = vrcp.f32 %v1333_v41  ;;  %1574 = vmatpush.bf16.msra.mxu2 %v1996_v42 }
 0xe88   : > { %v2168_v43 = vpop.eup %2167 }
 0xe89   : > { %v1337_v45 = vmul.f32 %v2168_v43, %v2152_v18  ;;  %v1400_v47 = vpop.xlane.xlu1 %1399 }
 0xe8a   : > { %2169 = vrcp.f32 %v1400_v47 }
 0xe8b   : > { %v1338_v46 = vpack.c.bf16 %v1337_v45, %v1336_v44  ;;  %v1995_v45 = vld [vmem:[%s2767_s4 + $0x10] sm:$0xff] }
 0xe8c   : > { %1575 = vmatpush.bf16.msra.mxu2 %v1995_v45 }
 0xe8d   : > { %1910 = vmatmul.msk.bf16.vlgmr.msrb.gmra.mxu2 %vm396_vm0, %v1338_v46 }
 0xe90   : > { %v2170_v50 = vpop.eup %2169 }
 0xe91   : > { %v1404_v52 = vmul.f32 %v2170_v50, %v2154_v20 }
 0xea1   : > { %v1407_v48 = vpop.permute.xlu1 %1406 }
 0xea2   : > { %1419 = vmatpush.bf16.msra.mxu0 %v1407_v48 }
 0xea3   : > { %v1397_v49 = vpop.xlane.xlu0 %1396 }
 0xea4   : > { %2171 = vrcp.f32 %v1397_v49 }
 0xeaa   : > { %v2172_v51 = vpop.eup %2171 }
 0xeab   : > { %v1403_v53 = vmul.f32 %v2172_v51, %v2156_v23 }
 0xead   : > { %v1405_v56 = vpack.c.bf16 %v1404_v52, %v1403_v53 }
 0xeaf   : > { %1912 = vmatmul.msk.bf16.vlgmr.msra.gmra.mxu0 %vm396_vm0, %v1405_v56 }
 0xef9   : > { %v1287_v57 = vpop.f32.mrf.mxu0 }
 0xf00   : > { %v1220_v60 = vpop.f32.mrf.mxu2 }
 0xf01   : > { %v1289_v61 = vpop.f32.mrf.mxu0 }
 0xf02   : > { %v2072_v62 = vpack.i.bf16 %v1289_v61, %v1287_v57 }
 0xf04   : > { %2073 = vrot.lane.b32.xlu2 %v2072_v62, %s2790_s13 }
 0xf08   : > { %v1222_v63 = vpop.f32.mrf.mxu2 }
 0xf10   : > { %v1354_v0 = vpop.f32.mrf.mxu2 }
 0xf18   : > { %v1356_v1 = vpop.f32.mrf.mxu2 }
 0xf19   : > { %v2077_v3 = vpack.i.bf16 %v1356_v1, %v1354_v0  ;;  %v1540_v1 = vperm.slane %v2585_v59, 4 }
 0xf1b   : > { %2078 = vrot.lane.b32.xlu2 %v2077_v3, %s2791_s25 }
 0xf2c   : > { %v1421_v4 = vpop.f32.mrf.mxu0 }
 0xf34   : > { %v1423_v5 = vpop.f32.mrf.mxu0 }
 0xf35   : > { %v2082_v6 = vpack.i.bf16 %v1423_v5, %v1421_v4 }
 0xf37   : > { %2083 = vrot.lane.b32.xlu2 %v2082_v6, %s2792_s17  ;;  %v1543_v6 = vperm.slane %v2585_v59, 5 }
 0xf5e   : > { %v2074_v55 = vpop.permute.xlu2 %2073 }
 0xf5f   : > { %v2076_v11 = vunpack.i.h.bf16 %v2074_v55  ;;  %v2075_v12 = vunpack.i.l.bf16 %v2074_v55 }
 0xf61   : > { %v1451_v17 = vsel %vm576_vm15, %v1222_v63, %v2076_v11  ;;  %v1450_v18 = vsel %vm576_vm15, %v1220_v60, %v2075_v12 }
 0xf75   : > { %v2079_v54 = vpop.permute.xlu2 %2078 }
 0xf76   : > { %v2081_v14 = vunpack.i.h.bf16 %v2079_v54  ;;  %v2080_v15 = vunpack.i.l.bf16 %v2079_v54 }
 0xf78   : > { %v1452_v8 = vsel %vm396_vm0, %v1450_v18, %v2080_v15  ;;  %v1453_v21 = vsel %vm396_vm0, %v1451_v17, %v2081_v14  ;;  %v2000_v14 = vld [vmem:[%s2768_s5 + $0x38] sm:$0xff]  ;;  %v1999_v15 = vld [vmem:[%s2768_s5 + $0x30] sm:$0xff]  ;;  %v1998_v17 = vld [vmem:[%s2768_s5 + $0x28] sm:$0xff] }
 0xf79   : > { %1641 = vmatpush.bf16.msra.mxu3 %v2000_v14 }
 0xf7d   : > { %1642 = vmatpush.bf16.msra.mxu3 %v1999_v15 }
 0xf81   : > { %1643 = vmatpush.bf16.msra.mxu3 %v1998_v17 }
 0xf91   : > { %v2084_v16 = vpop.permute.xlu2 %2083 }
 0xf92   : > { %v2086_v19 = vunpack.i.h.bf16 %v2084_v16  ;;  %v2085_v20 = vunpack.i.l.bf16 %v2084_v16  ;;  %v1552_v16 = vperm.slane %v2585_v59, 6 }
 0xf94   : > { %v1455_v22 = vsel %vm869_vm2, %v1453_v21, %v2086_v19  ;;  %v1454_v23 = vsel %vm869_vm2, %v1452_v8, %v2085_v20  ;;  %v1997_v20 = vld [vmem:[%s2768_s5 + $0x20] sm:$0xff] }
 0xf95   : > { %v1456_v24 = vpack.c.bf16 %v1455_v22, %v1454_v23  ;;  %1644 = vmatpush.bf16.msra.mxu3 %v1997_v20 }
 0xf97   : > { %1925 = vmatmul.msk.bf16.vlgmr.msra.gmra.mxu1 %vm428_vm1, %v1456_v24 }
0x1014   : > { %v1486_v27 = vpop.f32.mrf.mxu1 }
0x1015   : > { %v1491_v28 = vadd.f32 %v1486_v27, %v2559_v25 }
0x1017   : > { %v2670_v30 = vadd.f32 %v1493_v26, %v1491_v28 }
0x1019   : > { %v1496_v31 = vsel %vm428_vm1, %v2670_v30, 0.0 }
0x101a   : > { %1497 = vadd.xlane.f32.xlu2 %v1496_v31 }
0x101c   : > { %v1488_v40 = vpop.f32.mrf.mxu1 }
0x101d   : > { %v1492_v10 = vadd.f32 %v1488_v40, %v2564_v29 }
0x101f   : > { %v2675_v32 = vadd.f32 %v1493_v26, %v1492_v10 }
0x1021   : > { %v1499_v34 = vsel %vm428_vm1, %v2675_v32, 0.0 }
0x1022   : > { %1500 = vadd.xlane.f32.xlu1 %v1499_v34 }
0x108d   : > { %v1498_v35 = vpop.xlane.xlu2 %1497 }
0x108e   : > { %v1502_v36 = vmul.f32 %v1498_v35, %v2399_v33 }
0x1090   : > { %v1504_v25 = vsub.f32 %v2670_v30, %v1502_v36 }
0x1092   : > { %v1506_v2 = vmul.f32 %v1504_v25, %v1504_v25 }
0x1094   : > { %v1508_v13 = vsel %vm428_vm1, %v1506_v2, 0.0 }
0x1095   : > { %1509 = vadd.xlane.f32.xlu0 %v1508_v13  ;;  %v1501_v37 = vpop.xlane.xlu1 %1500 }
0x1096   : > { %v1503_v58 = vmul.f32 %v1501_v37, %v2399_v33 }
0x1098   : > { %v1505_v29 = vsub.f32 %v2675_v32, %v1503_v58 }
0x109a   : > { %v1507_v38 = vmul.f32 %v1505_v29, %v1505_v29 }
0x109c   : > { %v1511_v39 = vsel %vm428_vm1, %v1507_v38, 0.0 }
0x109d   : > { %1512 = vadd.xlane.f32.xlu0 %v1511_v39  ;;  %v1653_v39 = vperm.slane %v2585_v59, 7 }
0x1108   : > { %v1510_v41 = vpop.xlane.xlu0 %1509 }
0x1109   : > { %v1514_v43 = vmul.f32 %v1510_v41, %v2399_v33 }
0x110b   : > { %v1516_v44 = vadd.f32 1e-05, %v1514_v43 }
0x110d   : > { %2173 = vrsqrt.f32 %v1516_v44  ;;  %vm1524_vm15 = vweird.f32 %v1516_v44 }
0x1110   : > { %v1513_v46 = vpop.xlane.xlu0 %1512 }
0x1111   : > { %v1515_v47 = vmul.f32 %v1513_v46, %v2399_v33 }
0x1113   : > { %v2174_v48 = vpop.eup %2173  ;;  %v1517_v49 = vadd.f32 1e-05, %v1515_v47 }
0x1114   : > { %v1519_v50 = vmul.f32 %v2174_v48, %v1516_v44  ;;  %vm1525_vm0 = vweird.f32 %v2174_v48 }
0x1115   : > { %2175 = vrsqrt.f32 %v1517_v49  ;;  %vm1526_vm2 = vmor %vm1524_vm15, %vm1525_vm0  ;;  %vm1534_vm5 = vweird.f32 %v1517_v49 }
0x1116   : > { %v1520_v51 = vmul.f32 %v2174_v48, %v1519_v50 }
0x1118   : > { %v1521_v52 = vmul.f32 0.5, %v1520_v51 }
0x111a   : > { %v1522_v53 = vsub.f32 1.5, %v1521_v52 }
0x111b   : > { %v2176_v56 = vpop.eup %2175 }
0x111c   : > { %v1523_v57 = vmul.f32 %v2174_v48, %v1522_v53  ;;  %v1529_v60 = vmul.f32 %v2176_v56, %v1517_v49  ;;  %vm1535_vm4 = vweird.f32 %v2176_v56 }
0x111d   : > { %vm1536_vm6 = vmor %vm1534_vm5, %vm1535_vm4 }
0x111e   : > { %v1530_v61 = vmul.f32 %v2176_v56, %v1529_v60  ;;  %v1527_v62 = vsel %vm1526_vm2, %v2174_v48, %v1523_v57 }
0x111f   : > { %v1538_v3 = vmul.f32 %v1527_v62, %v1504_v25 }
0x1120   : > { %v1531_v63 = vmul.f32 0.5, %v1530_v61 }
0x1121   : > { %v1541_v7 = vmul.f32 %v1540_v1, %v1538_v3 }
0x1122   : > { %v1532_v0 = vsub.f32 1.5, %v1531_v63 }
0x1123   : > { %v1544_v54 = vadd.f32 %v1543_v6, %v1541_v7 }
0x1124   : > { %v1533_v4 = vmul.f32 %v2176_v56, %v1532_v0 }
0x1126   : > { %v1537_v5 = vsel %vm1536_vm6, %v2176_v56, %v1533_v4 }
0x1127   : > { %v1539_v9 = vmul.f32 %v1537_v5, %v1505_v29 }
0x1129   : > { %v1542_v55 = vmul.f32 %v1540_v1, %v1539_v9 }
0x112b   : > { %v1545_v11 = vadd.f32 %v1543_v6, %v1542_v55 }
0x112d   : > { %v1546_v12 = vpack.c.bf16 %v1545_v11, %v1544_v54  ;;  %v2185_v11 = vld [vmem:[%s2770_s7] sm:$0x1f] }
0x112e   : > { %v1703_v15 = vperm.slane %v2185_v11, 4 }
0x112f   : > { %1938 = vmatmul.msk.bf16.vlgmr.msra.gmra.mxu2 %vm428_vm1, %v1546_v12 }
0x11b2   : > { %v1577_v18 = vpop.f32.mrf.mxu2 }
0x11b3   : > { %v1578_v19 = vadd.f32 %v1577_v18, %v1552_v16 }
0x11b5   : > { %v1582_v8 = vmul.f32 %v1578_v19, %v1578_v19 }
0x11b7   : > { %v1584_v21 = vmul.f32 %v1582_v8, %v1578_v19 }
0x11b9   : > { %v1586_v22 = vmul.f32 0.044715, %v1584_v21 }
0x11ba   : > { %v1579_v23 = vpop.f32.mrf.mxu2 }
0x11bb   : > { %v1588_v24 = vadd.f32 %v1586_v22, %v1578_v19  ;;  %v1580_v26 = vadd.f32 %v1579_v23, %v1552_v16 }
0x11bd   : > { %v1590_v27 = vmul.f32 0.7978846, %v1588_v24  ;;  %v1583_v28 = vmul.f32 %v1580_v26, %v1580_v26 }
0x11bf   : > { %v1585_v31 = vmul.f32 %v1583_v28, %v1580_v26  ;;  %2177 = vtanh.f32 %v1590_v27 }
0x11c1   : > { %v1587_v40 = vmul.f32 0.044715, %v1585_v31 }
0x11c3   : > { %v1589_v10 = vadd.f32 %v1587_v40, %v1580_v26 }
0x11c5   : > { %v1591_v34 = vmul.f32 0.7978846, %v1589_v10  ;;  %v2178_v35 = vpop.eup %2177 }
0x11c6   : > { %v1594_v36 = vadd.f32 1.0, %v2178_v35 }
0x11c7   : > { %2179 = vtanh.f32 %v1591_v34 }
0x11c8   : > { %v1596_v2 = vmul.f32 0.5, %v1594_v36 }
0x11ca   : > { %v1598_v58 = vmul.f32 %v1596_v2, %v1578_v19 }
0x11cd   : > { %v2180_v25 = vpop.eup %2179 }
0x11ce   : > { %v1595_v13 = vadd.f32 1.0, %v2180_v25 }
0x11d0   : > { %v1597_v37 = vmul.f32 0.5, %v1595_v13 }
0x11d2   : > { %v1599_v29 = vmul.f32 %v1597_v37, %v1580_v26 }
0x11d4   : > { %v1600_v38 = vpack.c.bf16 %v1599_v29, %v1598_v58 }
0x11d6   : > { %1963 = vmatmul.msk.bf16.vlgmr.msra.gmra.mxu3 %vm1047_vm9, %v1600_v38 }
0x1259   : > { %v1646_v41 = vpop.f32.mrf.mxu3 }
0x125a   : > { %v1651_v42 = vadd.f32 %v1646_v41, %v2670_v30 }
0x125c   : > { %v1654_v43 = vadd.f32 %v1653_v39, %v1651_v42 }
0x125e   : > { %v1656_v44 = vsel %vm428_vm1, %v1654_v43, 0.0 }
0x125f   : > { %1657 = vadd.xlane.f32.xlu0 %v1656_v44 }
0x1261   : > { %v1648_v45 = vpop.f32.mrf.mxu3 }
0x1262   : > { %v1652_v46 = vadd.f32 %v1648_v45, %v2675_v32 }
0x1264   : > { %v1655_v47 = vadd.f32 %v1653_v39, %v1652_v46 }
0x1266   : > { %v1659_v48 = vsel %vm428_vm1, %v1655_v47, 0.0 }
0x1267   : > { %1660 = vadd.xlane.f32.xlu0 %v1659_v48 }
0x12d2   : > { %v1658_v49 = vpop.xlane.xlu0 %1657 }
0x12d3   : > { %v1662_v50 = vmul.f32 %v1658_v49, %v2399_v33 }
0x12d5   : > { %v1664_v51 = vsub.f32 %v1654_v43, %v1662_v50 }
0x12d7   : > { %v1666_v52 = vmul.f32 %v1664_v51, %v1664_v51 }
0x12d9   : > { %v1668_v59 = vsel %vm428_vm1, %v1666_v52, 0.0 }
0x12da   : > { %1669 = vadd.xlane.f32.xlu2 %v1668_v59  ;;  %v1661_v30 = vpop.xlane.xlu0 %1660 }
0x12db   : > { %v1663_v53 = vmul.f32 %v1661_v30, %v2399_v33 }
0x12dd   : > { %v1665_v56 = vsub.f32 %v1655_v47, %v1663_v53 }
0x12df   : > { %v1667_v57 = vmul.f32 %v1665_v56, %v1665_v56 }
0x12e1   : > { %v1671_v60 = vsel %vm428_vm1, %v1667_v57, 0.0 }
0x12e2   : > { %1672 = vadd.xlane.f32.xlu0 %v1671_v60 }
0x134d   : > { %v1670_v32 = vpop.xlane.xlu2 %1669 }
0x134e   : > { %v1674_v61 = vmul.f32 %v1670_v32, %v2399_v33 }
0x1350   : > { %v1676_v62 = vadd.f32 1e-05, %v1674_v61 }
0x1352   : > { %2181 = vrsqrt.f32 %v1676_v62  ;;  %vm1684_vm8 = vweird.f32 %v1676_v62 }
0x1355   : > { %v1673_v63 = vpop.xlane.xlu0 %1672 }
0x1356   : > { %v1675_v0 = vmul.f32 %v1673_v63, %v2399_v33  ;;  %v1700_v33 = vperm.slane %v2185_v11, 3 }
0x1358   : > { %v2182_v1 = vpop.eup %2181  ;;  %v1677_v3 = vadd.f32 1e-05, %v1675_v0 }
0x1359   : > { %v1679_v4 = vmul.f32 %v2182_v1, %v1676_v62  ;;  %vm1685_vm7 = vweird.f32 %v2182_v1 }
0x135a   : > { %2183 = vrsqrt.f32 %v1677_v3  ;;  %vm1686_vm9 = vmor %vm1684_vm8, %vm1685_vm7  ;;  %vm1694_vm11 = vweird.f32 %v1677_v3 }
0x135b   : > { %v1680_v5 = vmul.f32 %v2182_v1, %v1679_v4 }
0x135d   : > { %v1681_v6 = vmul.f32 0.5, %v1680_v5 }
0x135f   : > { %v1682_v7 = vsub.f32 1.5, %v1681_v6 }
0x1360   : > { %v2184_v9 = vpop.eup %2183 }
0x1361   : > { %v1683_v55 = vmul.f32 %v2182_v1, %v1682_v7  ;;  %v1689_v54 = vmul.f32 %v2184_v9, %v1677_v3  ;;  %vm1695_vm10 = vweird.f32 %v2184_v9 }
0x1362   : > { %vm1696_vm12 = vmor %vm1694_vm11, %vm1695_vm10 }
0x1363   : > { %v1687_v12 = vsel %vm1686_vm9, %v2182_v1, %v1683_v55  ;;  %v1690_v14 = vmul.f32 %v2184_v9, %v1689_v54 }
0x1364   : > { %v1698_v16 = vmul.f32 %v1687_v12, %v1664_v51 }
0x1365   : > { %v1691_v17 = vmul.f32 0.5, %v1690_v14 }
0x1366   : > { %v1701_v18 = vmul.f32 %v1700_v33, %v1698_v16 }
0x1367   : > { %v1692_v19 = vsub.f32 1.5, %v1691_v17 }
0x1368   : > { %v1704_v20 = vadd.f32 %v1703_v15, %v1701_v18 }
0x1369   : > { %v1693_v8 = vmul.f32 %v2184_v9, %v1692_v19 }
0x136a   : > { %1706 = vst.msk [vmem:[%s301_s12] sm:$0xff] %vm428_vm1, %v1704_v20 }
0x136b   : > { %v1697_v21 = vsel %vm1696_vm12, %v2184_v9, %v1693_v8 }
0x136c   : > { %v1699_v22 = vmul.f32 %v1697_v21, %v1665_v56 }
0x136e   : > { %v1702_v23 = vmul.f32 %v1700_v33, %v1699_v22 }
0x1370   : > { %v1705_v24 = vadd.f32 %v1703_v15, %v1702_v23 }
0x1372   : > { %1707 = vst.msk [vmem:[%s301_s12 + $0x8] sm:$0xff] %vm428_vm1, %v1705_v24 }
0x1373   : > { %2213 = shalt.err (!%p2210_p3)
}
0x1374   : > { %s2265_s18 = smov 128  }
0x1375   : > { %2002 = dma.vmem_to_hbm [thread:$0]  (%p2349_p5), %s1722_s21, 256, %s1724_s26, %s1709_s9, %s2265_s18, %s2265_s18, %s2790_s13  }
0x1376 PF: > { %p2008_p4 = scmp.ge.s32.totalorder %s2248_s30, 2  ;;  %s1738_s12 = sand.u32 1, %s2236_s27  }
0x1377   : > { %s1739_s20 = scalar_lea.sflag [#allocation3], %s1738_s12 }
0x1378   : > { %p2005_p7 = pnand %p2008_p4, %p2353_p6 }
0x137a   : > { %p2006_p8 = pneg %p2005_p7 }
0x137c   : > { %2231 = dma.done.wait (%p2006_p8), %s1739_s20, 256  }
0x137d   : > { %2233 = vsyncadd (%p2006_p8), %s1739_s20, 4294967040  ;;  %p18_p9 = scmp.ge.s32.totalorder %s2336_s11, 4   ;;  %s2793_s27 = smov %s2240_s28 }
0x137e   : > { %s2794_s28 = smov %s2244_s29  ;;  %s2795_s29 = smov %s2347_s14 }
0x137f   : > { %s2796_s30 = smov %s2336_s11  ;;  %20 = sbr.rel (!%p18_p9) target bundleno = 3 (0x3), region = 92 }
0x1384   :  { %1745 = vsyncpa [#allocation3], 1 }
0x1385   :  { %1747 = vsyncpa [#allocation3 + $0x1], 1 }

</bundles_post_ra>
